<compile_context>
chip_gen: v7x
topology: tpu7x:2x2x1
jax: 0.10.0
libtpu: 0.0.40
codegen_flags: <defaults>
</compile_context>

<pallas_src>
import functools
import math

import jax
import jax.numpy as jnp
from jax.experimental import pallas as pl
from jax.experimental.pallas import tpu as pltpu


# ----------------------------------------------------------------------------
# Pallas kernel 1: RPN head (3x3 conv + ReLU, fused 1x1 cls/bbox convs)
# ----------------------------------------------------------------------------
def rpn_head_kernel(x_ref, xtop_ref, xbot_ref, wc_ref, bc_ref, wh_ref, bh_ref,
                    out_ref, xpad_ref, patch_ref, acc_ref, *, TH, W, A):
    # x_ref:    (1, TH, W, C)   bf16  current row tile (NHWC)
    # xtop_ref: (1, 1, W, C)    bf16  row above the tile (clamped at image top)
    # xbot_ref: (1, 1, W, C)    bf16  row below the tile (clamped at image bottom)
    # wc_ref:   (3, 3C, C)      bf16  3x3 conv weights; wc[kh] rows ordered (kw, cin)
    # bc_ref:   (1, C)          f32
    # wh_ref:   (C, 5A)         bf16  fused [cls | box] 1x1 weights
    # bh_ref:   (1, 5A)         f32
    # out_ref:  (1, TH*W, 5A)   f32   fused [cls | box] output
    # xpad_ref: (TH+2, W+2, C)  bf16  halo scratch
    # patch_ref:(2, TH, W, 3C)  bf16  double-buffered im2col slab (one kernel row)
    # acc_ref:  (TH*W, C)       f32   conv accumulator
    C = x_ref.shape[3]
    rt = pl.program_id(1)
    n_rt = pl.num_programs(1)

    # ---- halo tile: border-only zeroing, single bf16 feature copy -----------
    zcol = jnp.zeros((TH + 2, 1, C), jnp.bfloat16)
    xpad_ref[:, 0:1, :] = zcol                        # left 1-px border
    xpad_ref[:, W + 1:W + 2, :] = zcol                # right 1-px border
    xpad_ref[1:TH + 1, 1:W + 1, :] = x_ref[0]         # tile interior
    xpad_ref[0:1, 1:W + 1, :] = xtop_ref[0]           # top halo row
    xpad_ref[TH + 1:TH + 2, 1:W + 1, :] = xbot_ref[0]  # bottom halo row

    zrow = jnp.zeros((1, W, C), jnp.bfloat16)

    @pl.when(rt == 0)                                 # tile touches image top
    def _():
        xpad_ref[0:1, 1:W + 1, :] = zrow

    @pl.when(rt == n_rt - 1)                          # tile touches image bottom
    def _():
        xpad_ref[TH + 1:TH + 2, 1:W + 1, :] = zrow

    # ---- 3x3 conv as three accumulated K=3C MXU matmuls (one per kh) --------
    for kh in range(3):
        s = kh % 2                                    # double-buffered slab
        for kw in range(3):
            patch_ref[s, :, :, kw * C:(kw + 1) * C] = (
                xpad_ref[kh:kh + TH, kw:kw + W, :])
        part = jnp.dot(patch_ref[s].reshape(TH * W, 3 * C), wc_ref[kh],
                       preferred_element_type=jnp.float32)
        if kh == 0:
            acc_ref[...] = part
        else:
            acc_ref[...] += part

    # ---- bias + ReLU, fused [cls | box] 1x1 convs, single lane-dense store --
    t = jnp.maximum(acc_ref[...] + bc_ref[...], 0.0).astype(jnp.bfloat16)
    out_ref[0] = (jnp.dot(t, wh_ref[...], preferred_element_type=jnp.float32)
                  + bh_ref[...])


def _row_tile(h, max_rows):
    th = 1
    for d in range(1, min(h, max_rows) + 1):
        if h % d == 0:
            th = d
    return th


def rpn_head_pallas(x_nchw, wc, bc, wh, bh, A, *, max_tile_rows=8):
    """RPN head on one feature level. Returns fused logits (B, H*W, 5A) f32."""
    B, C, H, W = x_nchw.shape
    # One host relayout pass: NCHW -> NHWC and f32 -> bf16 (halves input DMA,
    # removes all in-kernel casts of the feature map).
    x = jnp.transpose(x_nchw, (0, 2, 3, 1)).astype(jnp.bfloat16)

    TH = _row_tile(H, max_tile_rows)
    n_rt = H // TH

    kernel = functools.partial(rpn_head_kernel, TH=TH, W=W, A=A)
    out = pl.pallas_call(
        kernel,
        out_shape=jax.ShapeDtypeStruct((B, H * W, 5 * A), jnp.float32),
        grid=(B, n_rt),
        in_specs=[
            # current row tile
            pl.BlockSpec((1, TH, W, C), lambda b, r: (b, r, 0, 0)),
            # 1-row halos above / below; row index clamped at the image edge,
            # the kernel zeroes the halo when the tile touches the border.
            pl.BlockSpec((1, 1, W, C),
                         lambda b, r: (b, jnp.maximum(r * TH - 1, 0), 0, 0)),
            pl.BlockSpec((1, 1, W, C),
                         lambda b, r: (b, jnp.minimum(r * TH + TH, H - 1), 0, 0)),
            pl.BlockSpec((3, 3 * C, C), lambda b, r: (0, 0, 0)),
            pl.BlockSpec((1, C), lambda b, r: (0, 0)),
            pl.BlockSpec((C, 5 * A), lambda b, r: (0, 0)),
            pl.BlockSpec((1, 5 * A), lambda b, r: (0, 0)),
        ],
        out_specs=pl.BlockSpec((1, TH * W, 5 * A), lambda b, r: (b, r, 0)),
        scratch_shapes=[
            pltpu.VMEM((TH + 2, W + 2, C), jnp.bfloat16),
            pltpu.VMEM((2, TH, W, 3 * C), jnp.bfloat16),
            pltpu.VMEM((TH * W, C), jnp.float32),
        ],
        compiler_params=pltpu.CompilerParams(
            # batch and row-tile axes are independent -> shard across TCs (v7x)
            dimension_semantics=("parallel", "parallel"),
            # <= ~48 MB keeps the tiled working set inside v7x's 64 MiB VMEM
            # (v6e/v5e could raise this for the small P4/P5 levels).
            vmem_limit_bytes=48 * 1024 * 1024),
    )(x, x, x, wc, bc, wh, bh)
    return out


# ----------------------------------------------------------------------------
# Pallas kernel 2: BoxCoder.decode (weights = (1,1,1,1), torchvision semantics)
# ----------------------------------------------------------------------------
_BBOX_XFORM_CLIP = math.log(1000.0 / 16.0)


def box_decode_kernel(p_ref, o_ref):
    # p_ref: (8, TILE)  rows 0-3 anchors (x1,y1,x2,y2), rows 4-7 deltas (dx,dy,dw,dh)
    # o_ref: (4, TILE)  proposals (x1,y1,x2,y2)
    x1, y1, x2, y2 = p_ref[0:1, :], p_ref[1:2, :], p_ref[2:3, :], p_ref[3:4, :]
    widths = x2 - x1
    heights = y2 - y1
    ctr_x = x1 + 0.5 * widths
    ctr_y = y1 + 0.5 * heights

    dx, dy = p_ref[4:5, :], p_ref[5:6, :]
    dw = jnp.minimum(p_ref[6:7, :], _BBOX_XFORM_CLIP)
    dh = jnp.minimum(p_ref[7:8, :], _BBOX_XFORM_CLIP)

    pred_ctr_x = dx * widths + ctr_x
    pred_ctr_y = dy * heights + ctr_y
    pred_w = jnp.exp(dw) * widths
    pred_h = jnp.exp(dh) * heights

    o_ref[0:1, :] = pred_ctr_x - 0.5 * pred_w
    o_ref[1:2, :] = pred_ctr_y - 0.5 * pred_h
    o_ref[2:3, :] = pred_ctr_x + 0.5 * pred_w
    o_ref[3:4, :] = pred_ctr_y + 0.5 * pred_h


def decode_boxes_pallas(deltas, anchors_cm, *, tile=8192):
    """deltas: (N,4) row-major; anchors_cm: (4,N) coords-major -> proposals (N,4)."""
    n = deltas.shape[0]
    tile = min(tile, max(128, -(-n // 128) * 128))   # lane tile, multiple of 128
    n_pad = -(-n // tile) * tile

    packed = jnp.concatenate(
        [anchors_cm.astype(jnp.float32),
         jnp.transpose(deltas).astype(jnp.float32)], axis=0)      # (8, N)
    if n_pad != n:
        packed = jnp.pad(packed, ((0, 0), (0, n_pad - n)))

    out = pl.pallas_call(
        box_decode_kernel,
        out_shape=jax.ShapeDtypeStruct((4, n_pad), jnp.float32),
        grid=(n_pad // tile,),
        in_specs=[pl.BlockSpec((8, tile), lambda i: (0, i))],
        out_specs=pl.BlockSpec((4, tile), lambda i: (0, i)),
        compiler_params=pltpu.CompilerParams(
            dimension_semantics=("parallel",)),
    )(packed)
    return jnp.transpose(out[:, :n])                 # back to (N, 4)


# ----------------------------------------------------------------------------
# Plain-JAX glue: anchor generation (torchvision AnchorGenerator semantics)
# ----------------------------------------------------------------------------
def generate_base_anchors(scales, aspect_ratios):
    scales = jnp.asarray(scales, jnp.float32)
    ratios = jnp.asarray(aspect_ratios, jnp.float32)
    h_ratios = jnp.sqrt(ratios)
    w_ratios = 1.0 / h_ratios
    ws = (w_ratios[:, None] * scales[None, :]).reshape(-1)
    hs = (h_ratios[:, None] * scales[None, :]).reshape(-1)
    base = jnp.stack([-ws, -hs, ws, hs], axis=1) / 2.0
    return jnp.round(base)                           # (A, 4)


def make_anchors_coords_major(img_h, img_w, feat_shapes, base_anchors):
    """Anchors for one image, coords-major: (4, sum H*W*A)."""
    base_t = jnp.transpose(base_anchors)             # (4, A)
    levels = []
    for (fh, fw) in feat_shapes:
        stride_h = img_h // fh
        stride_w = img_w // fw
        shifts_x = jnp.arange(fw, dtype=jnp.float32) * stride_w
        shifts_y = jnp.arange(fh, dtype=jnp.float32) * stride_h
        sy, sx = jnp.meshgrid(shifts_y, shifts_x, indexing="ij")
        sx = sx.reshape(-1)
        sy = sy.reshape(-1)
        shifts = jnp.stack([sx, sy, sx, sy], axis=0)              # (4, H*W)
        anc = (shifts[:, :, None] + base_t[:, None, :]).reshape(4, -1)
        levels.append(anc)
    return jnp.concatenate(levels, axis=1)


# ----------------------------------------------------------------------------
# RPN forward (reproduces the provided RPN.forward up to `proposals`)
# ----------------------------------------------------------------------------
def rpn_forward(imgs, feats, head_params, base_anchors, num_anchors):
    B = imgs.shape[0]
    img_h, img_w = imgs.shape[2], imgs.shape[3]
    A = num_anchors

    w_conv, b_conv, w_cls, b_cls, w_box, b_box = head_params
    C = w_conv.shape[2]
    # NOTE: torchvision Conv2d weights are (cout, cin, kh, kw); permute to
    # (kh, kw, cin, cout) before packing when porting a real checkpoint.
    wc = w_conv.reshape(3, 3 * C, C).astype(jnp.bfloat16)         # per-kh (3C, C)
    bc = b_conv.reshape(1, C).astype(jnp.float32)
    wh = jnp.concatenate([w_cls, w_box], axis=1).astype(jnp.bfloat16)   # (C, 5A)
    bh = jnp.concatenate([b_cls, b_box], axis=1).reshape(1, 5 * A).astype(jnp.float32)

    cls_flat, box_flat, feat_shapes = [], [], []
    for x in feats:
        _, _, H, W = x.shape
        out = rpn_head_pallas(x, wc, bc, wh, bh, A)               # (B, H*W, 5A)
        feat_shapes.append((H, W))
        # equivalent of `processing()`: (h, w, anchor, class/coord) ordering
        cls_flat.append(out[:, :, :A].reshape(B, H * W * A, 1))
        box_flat.append(out[:, :, A:].reshape(B, H * W * A, 4))

    # equivalent of concatBoxInfo
    bbox_cls = jnp.concatenate(cls_flat, axis=1).reshape(-1, 1)
    bbox_regression = jnp.concatenate(box_flat, axis=1).reshape(-1, 4)

    # anchor_generator(imgs, feats): identical anchors per image, image-major
    anchors_cm = make_anchors_coords_major(img_h, img_w, feat_shapes, base_anchors)
    anchors_cm = jnp.tile(anchors_cm, (1, B))                     # (4, B*sumHWA)

    # boxCoder.decode + view(imgNum, -1, 4)
    proposals = decode_boxes_pallas(bbox_regression, anchors_cm)
    proposals = proposals.reshape(B, -1, 4)

    # TODO(synk): filter_proposals / NMS / matcher / fg-bg sampler are not part
    # of the provided forward snippet and are therefore not implemented here.
    return bbox_cls, bbox_regression, proposals


# ----------------------------------------------------------------------------
# Pure-JAX f32 references (for tolerance checks in the self-test)
# ----------------------------------------------------------------------------
def rpn_head_reference(x_nchw, w_conv, b_conv, w_cls, b_cls, w_box, b_box):
    x = jnp.transpose(x_nchw, (0, 2, 3, 1)).astype(jnp.float32)   # NHWC
    B, H, W, C = x.shape
    xp = jnp.pad(x, ((0, 0), (1, 1), (1, 1), (0, 0)))
    t = jnp.zeros((B, H, W, C), jnp.float32)
    for kh in range(3):
        for kw in range(3):
            t = t + jnp.einsum("bhwc,cd->bhwd",
                               xp[:, kh:kh + H, kw:kw + W, :], w_conv[kh, kw])
    t = jnp.maximum(t + b_conv.reshape(1, 1, 1, -1), 0.0)
    cls = jnp.einsum("bhwc,ca->bhwa", t, w_cls) + b_cls.reshape(1, 1, 1, -1)
    box = jnp.einsum("bhwc,ca->bhwa", t, w_box) + b_box.reshape(1, 1, 1, -1)
    return cls.reshape(B, H * W, -1), box.reshape(B, H * W, -1)


def decode_reference(deltas, anchors):
    widths = anchors[:, 2] - anchors[:, 0]
    heights = anchors[:, 3] - anchors[:, 1]
    ctr_x = anchors[:, 0] + 0.5 * widths
    ctr_y = anchors[:, 1] + 0.5 * heights
    dx, dy = deltas[:, 0], deltas[:, 1]
    dw = jnp.minimum(deltas[:, 2], _BBOX_XFORM_CLIP)
    dh = jnp.minimum(deltas[:, 3], _BBOX_XFORM_CLIP)
    pcx = dx * widths + ctr_x
    pcy = dy * heights + ctr_y
    pw = jnp.exp(dw) * widths
    ph = jnp.exp(dh) * heights
    return jnp.stack([pcx - 0.5 * pw, pcy - 0.5 * ph,
                      pcx + 0.5 * pw, pcy + 0.5 * ph], axis=1)


# ----------------------------------------------------------------------------
if __name__ == "__main__":
    key = jax.random.PRNGKey(0)
    ks = jax.random.split(key, 8)

    B, C = 2, 16                 # batch, feature channels
    A = 3                        # anchors per location (3 aspect ratios)
    img_h = img_w = 64
    imgs = jax.random.normal(ks[0], (B, 3, img_h, img_w), jnp.float32)

    # two feature levels (dict values, as in the reference forward)
    feats = [
        jax.random.normal(ks[1], (B, C, 16, 16), jnp.float32),
        jax.random.normal(ks[2], (B, C, 8, 8), jnp.float32),
    ]
    feat_shapes = [(16, 16), (8, 8)]

    # deterministic synthetic head parameters (torchvision RPNHead shapes)
    w_conv = jax.random.normal(ks[3], (3, 3, C, C), jnp.float32) * 0.01
    b_conv = jnp.zeros((1, C), jnp.float32)
    w_cls = jax.random.normal(ks[4], (C, A), jnp.float32) * 0.01
    b_cls = jnp.zeros((1, A), jnp.float32)
    w_box = jax.random.normal(ks[5], (C, 4 * A), jnp.float32) * 0.01
    b_box = jnp.zeros((1, 4 * A), jnp.float32)
    head_params = (w_conv, b_conv, w_cls, b_cls, w_box, b_box)

    base_anchors = generate_base_anchors((32.0,), (0.5, 1.0, 2.0))  # (A, 4)

    bbox_cls, bbox_reg, proposals = rpn_forward(imgs, feats, head_params,
                                                base_anchors, A)
    jax.block_until_ready((bbox_cls, bbox_reg, proposals))

    total_per_img = (16 * 16 + 8 * 8) * A
    assert bbox_cls.shape == (B * total_per_img, 1)
    assert bbox_reg.shape == (B * total_per_img, 4)
    assert proposals.shape == (B, total_per_img, 4)
    assert bool(jnp.all(jnp.isfinite(proposals)))

    # --- head correctness vs f32 reference (bf16 MXU -> loose tolerance) -----
    cls_l, box_l = [], []
    for x in feats:
        c_r, b_r = rpn_head_reference(x, w_conv, b_conv, w_cls, b_cls,
                                      w_box, b_box)
        cls_l.append(c_r.reshape(B, -1, 1))
        box_l.append(b_r.reshape(B, -1, 4))
    bbox_cls_ref = jnp.concatenate(cls_l, axis=1).reshape(-1, 1)
    bbox_reg_ref = jnp.concatenate(box_l, axis=1).reshape(-1, 4)
    assert bool(jnp.allclose(bbox_cls, bbox_cls_ref, atol=2e-3, rtol=2e-2))
    assert bool(jnp.allclose(bbox_reg, bbox_reg_ref, atol=2e-3, rtol=2e-2))

    # --- decode correctness vs f32 reference ---------------------------------
    anchors_cm = jnp.tile(
        make_anchors_coords_major(img_h, img_w, feat_shapes, base_anchors),
        (1, B))
    prop_ref = decode_reference(bbox_reg, jnp.transpose(anchors_cm)).reshape(B, -1, 4)
    assert bool(jnp.allclose(proposals, prop_ref, atol=1e-2, rtol=1e-4))

    print("KERNEL_OK")
</pallas_src>

<mosaic_0001>
module attributes {stable_mosaic.version = 11 : i64} {
  func.func @rpn_head_kernel(%arg0: i32, %arg1: i32, %arg2: memref<1x8x16x16xbf16, #tpu.memory_space<vmem>>, %arg3: memref<1x1x16x16xbf16, #tpu.memory_space<vmem>>, %arg4: memref<1x1x16x16xbf16, #tpu.memory_space<vmem>>, %arg5: memref<3x48x16xbf16, #tpu.memory_space<vmem>>, %arg6: memref<1x16xf32, #tpu.memory_space<vmem>>, %arg7: memref<16x15xbf16, #tpu.memory_space<vmem>>, %arg8: memref<1x15xf32, #tpu.memory_space<vmem>>, %arg9: memref<1x128x15xf32, #tpu.memory_space<vmem>>, %arg10: memref<10x18x16xbf16, #tpu.memory_space<vmem>>, %arg11: memref<2x8x16x48xbf16, #tpu.memory_space<vmem>>, %arg12: memref<128x16xf32, #tpu.memory_space<vmem>>) attributes {dimension_semantics = [#tpu.dimension_semantics<parallel>, #tpu.dimension_semantics<parallel>], iteration_bounds = array<i64: 2, 2>, scalar_prefetch = 0 : i64, scratch_operands = 3 : i64, tpu.core_type = #tpu.core_type<tc>, window_params = [{transform_indices = @transform_0, window_bounds = array<i64: 1, 8, 16, 16>}, {transform_indices = @transform_1, window_bounds = array<i64: 1, 1, 16, 16>}, {transform_indices = @transform_2, window_bounds = array<i64: 1, 1, 16, 16>}, {pipeline_mode = #tpu.pipeline_mode<synchronous>, transform_indices = @transform_3, window_bounds = array<i64: 3, 48, 16>}, {pipeline_mode = #tpu.pipeline_mode<synchronous>, transform_indices = @transform_4, window_bounds = array<i64: 1, 16>}, {pipeline_mode = #tpu.pipeline_mode<synchronous>, transform_indices = @transform_5, window_bounds = array<i64: 16, 15>}, {pipeline_mode = #tpu.pipeline_mode<synchronous>, transform_indices = @transform_6, window_bounds = array<i64: 1, 15>}, {transform_indices = @transform_7, window_bounds = array<i64: 1, 128, 15>}]} {
    %cst = arith.constant 0.000000e+00 : bf16
    %0 = vector.broadcast %cst : bf16 to vector<10x1x16xbf16>
    %c0 = arith.constant 0 : index
    %c0_0 = arith.constant 0 : index
    %c0_1 = arith.constant 0 : index
    %1 = vector.load %arg10[%c0, %c0_0, %c0_1] : memref<10x18x16xbf16, #tpu.memory_space<vmem>>, vector<10x1x16xbf16>
    tpu.vector_store %arg10[%c0, %c0_0, %c0_1], %0 {strides = array<i32>} : memref<10x18x16xbf16, #tpu.memory_space<vmem>>, vector<10x1x16xbf16>,
    %c0_2 = arith.constant 0 : index
    %c17 = arith.constant 17 : index
    %c0_3 = arith.constant 0 : index
    %2 = vector.load %arg10[%c0_2, %c17, %c0_3] : memref<10x18x16xbf16, #tpu.memory_space<vmem>>, vector<10x1x16xbf16>
    tpu.vector_store %arg10[%c0_2, %c17, %c0_3], %0 {strides = array<i32>} : memref<10x18x16xbf16, #tpu.memory_space<vmem>>, vector<10x1x16xbf16>,
    %c0_4 = arith.constant 0 : index
    %c0_5 = arith.constant 0 : index
    %c0_6 = arith.constant 0 : index
    %c0_7 = arith.constant 0 : index
    %3 = vector.load %arg2[%c0_4, %c0_5, %c0_6, %c0_7] : memref<1x8x16x16xbf16, #tpu.memory_space<vmem>>, vector<1x8x16x16xbf16>
    %4 = vector.shape_cast %3 : vector<1x8x16x16xbf16> to vector<8x16x16xbf16>
    %c1 = arith.constant 1 : index
    %c1_8 = arith.constant 1 : index
    %c0_9 = arith.constant 0 : index
    %5 = vector.load %arg10[%c1, %c1_8, %c0_9] : memref<10x18x16xbf16, #tpu.memory_space<vmem>>, vector<8x16x16xbf16>
    tpu.vector_store %arg10[%c1, %c1_8, %c0_9], %4 {strides = array<i32>} : memref<10x18x16xbf16, #tpu.memory_space<vmem>>, vector<8x16x16xbf16>,
    %c0_10 = arith.constant 0 : index
    %c0_11 = arith.constant 0 : index
    %c0_12 = arith.constant 0 : index
    %c0_13 = arith.constant 0 : index
    %6 = vector.load %arg3[%c0_10, %c0_11, %c0_12, %c0_13] : memref<1x1x16x16xbf16, #tpu.memory_space<vmem>>, vector<1x1x16x16xbf16>
    %7 = vector.shape_cast %6 : vector<1x1x16x16xbf16> to vector<1x16x16xbf16>
    %c0_14 = arith.constant 0 : index
    %c1_15 = arith.constant 1 : index
    %c0_16 = arith.constant 0 : index
    %8 = vector.load %arg10[%c0_14, %c1_15, %c0_16] : memref<10x18x16xbf16, #tpu.memory_space<vmem>>, vector<1x16x16xbf16>
    tpu.vector_store %arg10[%c0_14, %c1_15, %c0_16], %7 {strides = array<i32>} : memref<10x18x16xbf16, #tpu.memory_space<vmem>>, vector<1x16x16xbf16>,
    %c0_17 = arith.constant 0 : index
    %c0_18 = arith.constant 0 : index
    %c0_19 = arith.constant 0 : index
    %c0_20 = arith.constant 0 : index
    %9 = vector.load %arg4[%c0_17, %c0_18, %c0_19, %c0_20] : memref<1x1x16x16xbf16, #tpu.memory_space<vmem>>, vector<1x1x16x16xbf16>
    %10 = vector.shape_cast %9 : vector<1x1x16x16xbf16> to vector<1x16x16xbf16>
    %c9 = arith.constant 9 : index
    %c1_21 = arith.constant 1 : index
    %c0_22 = arith.constant 0 : index
    %11 = vector.load %arg10[%c9, %c1_21, %c0_22] : memref<10x18x16xbf16, #tpu.memory_space<vmem>>, vector<1x16x16xbf16>
    tpu.vector_store %arg10[%c9, %c1_21, %c0_22], %10 {strides = array<i32>} : memref<10x18x16xbf16, #tpu.memory_space<vmem>>, vector<1x16x16xbf16>,
    %cst_23 = arith.constant 0.000000e+00 : bf16
    %12 = vector.broadcast %cst_23 : bf16 to vector<1x16x16xbf16>
    %c0_i32 = arith.constant 0 : i32
    %13 = arith.cmpi eq, %arg1, %c0_i32 : i32
    %14 = arith.extui %13 : i1 to i32
    %c0_i32_24 = arith.constant 0 : i32
    %15 = arith.cmpi ne, %14, %c0_i32_24 : i32
    scf.if %15 {
      %c0_133 = arith.constant 0 : index
      %c1_134 = arith.constant 1 : index
      %c0_135 = arith.constant 0 : index
      %95 = vector.load %arg10[%c0_133, %c1_134, %c0_135] : memref<10x18x16xbf16, #tpu.memory_space<vmem>>, vector<1x16x16xbf16>
      tpu.vector_store %arg10[%c0_133, %c1_134, %c0_135], %12 {strides = array<i32>} : memref<10x18x16xbf16, #tpu.memory_space<vmem>>, vector<1x16x16xbf16>,
    } else {
    }
    %c1_i32 = arith.constant 1 : i32
    %16 = arith.cmpi eq, %arg1, %c1_i32 : i32
    %17 = arith.extui %16 : i1 to i32
    %c0_i32_25 = arith.constant 0 : i32
    %18 = arith.cmpi ne, %17, %c0_i32_25 : i32
    scf.if %18 {
      %c9_133 = arith.constant 9 : index
      %c1_134 = arith.constant 1 : index
      %c0_135 = arith.constant 0 : index
      %95 = vector.load %arg10[%c9_133, %c1_134, %c0_135] : memref<10x18x16xbf16, #tpu.memory_space<vmem>>, vector<1x16x16xbf16>
      tpu.vector_store %arg10[%c9_133, %c1_134, %c0_135], %12 {strides = array<i32>} : memref<10x18x16xbf16, #tpu.memory_space<vmem>>, vector<1x16x16xbf16>,
    } else {
    }
    %c0_26 = arith.constant 0 : index
    %c0_27 = arith.constant 0 : index
    %c0_28 = arith.constant 0 : index
    %19 = vector.load %arg10[%c0_26, %c0_27, %c0_28] : memref<10x18x16xbf16, #tpu.memory_space<vmem>>, vector<8x16x16xbf16>
    %c0_29 = arith.constant 0 : index
    %c0_30 = arith.constant 0 : index
    %c0_31 = arith.constant 0 : index
    %c0_32 = arith.constant 0 : index
    %20 = vector.load %arg11[%c0_29, %c0_30, %c0_31, %c0_32] : memref<2x8x16x48xbf16, #tpu.memory_space<vmem>>, vector<1x8x16x16xbf16>
    %21 = vector.shape_cast %20 : vector<1x8x16x16xbf16> to vector<8x16x16xbf16>
    %22 = vector.shape_cast %19 : vector<8x16x16xbf16> to vector<1x8x16x16xbf16>
    tpu.vector_store %arg11[%c0_29, %c0_30, %c0_31, %c0_32], %22 {strides = array<i32>} : memref<2x8x16x48xbf16, #tpu.memory_space<vmem>>, vector<1x8x16x16xbf16>,
    %c0_33 = arith.constant 0 : index
    %c1_34 = arith.constant 1 : index
    %c0_35 = arith.constant 0 : index
    %23 = vector.load %arg10[%c0_33, %c1_34, %c0_35] : memref<10x18x16xbf16, #tpu.memory_space<vmem>>, vector<8x16x16xbf16>
    %c0_36 = arith.constant 0 : index
    %c0_37 = arith.constant 0 : index
    %c0_38 = arith.constant 0 : index
    %c16 = arith.constant 16 : index
    %24 = vector.load %arg11[%c0_36, %c0_37, %c0_38, %c16] : memref<2x8x16x48xbf16, #tpu.memory_space<vmem>>, vector<1x8x16x16xbf16>
    %25 = vector.shape_cast %24 : vector<1x8x16x16xbf16> to vector<8x16x16xbf16>
    %26 = vector.shape_cast %23 : vector<8x16x16xbf16> to vector<1x8x16x16xbf16>
    tpu.vector_store %arg11[%c0_36, %c0_37, %c0_38, %c16], %26 {strides = array<i32>} : memref<2x8x16x48xbf16, #tpu.memory_space<vmem>>, vector<1x8x16x16xbf16>,
    %c0_39 = arith.constant 0 : index
    %c2 = arith.constant 2 : index
    %c0_40 = arith.constant 0 : index
    %27 = vector.load %arg10[%c0_39, %c2, %c0_40] : memref<10x18x16xbf16, #tpu.memory_space<vmem>>, vector<8x16x16xbf16>
    %c0_41 = arith.constant 0 : index
    %c0_42 = arith.constant 0 : index
    %c0_43 = arith.constant 0 : index
    %c32 = arith.constant 32 : index
    %28 = vector.load %arg11[%c0_41, %c0_42, %c0_43, %c32] : memref<2x8x16x48xbf16, #tpu.memory_space<vmem>>, vector<1x8x16x16xbf16>
    %29 = vector.shape_cast %28 : vector<1x8x16x16xbf16> to vector<8x16x16xbf16>
    %30 = vector.shape_cast %27 : vector<8x16x16xbf16> to vector<1x8x16x16xbf16>
    tpu.vector_store %arg11[%c0_41, %c0_42, %c0_43, %c32], %30 {strides = array<i32>} : memref<2x8x16x48xbf16, #tpu.memory_space<vmem>>, vector<1x8x16x16xbf16>,
    %c0_44 = arith.constant 0 : index
    %c0_45 = arith.constant 0 : index
    %c0_46 = arith.constant 0 : index
    %c0_47 = arith.constant 0 : index
    %31 = vector.load %arg11[%c0_44, %c0_45, %c0_46, %c0_47] : memref<2x8x16x48xbf16, #tpu.memory_space<vmem>>, vector<1x8x16x48xbf16>
    %32 = vector.shape_cast %31 : vector<1x8x16x48xbf16> to vector<8x16x48xbf16>
    %33 = vector.shape_cast %32 : vector<8x16x48xbf16> to vector<128x48xbf16>
    %c0_48 = arith.constant 0 : index
    %c0_49 = arith.constant 0 : index
    %c0_50 = arith.constant 0 : index
    %34 = vector.load %arg5[%c0_48, %c0_49, %c0_50] : memref<3x48x16xbf16, #tpu.memory_space<vmem>>, vector<1x48x16xbf16>
    %35 = vector.shape_cast %34 : vector<1x48x16xbf16> to vector<48x16xbf16>
    %cst_51 = arith.constant dense<0.000000e+00> : vector<128x16xf32>
    %36 = tpu.matmul %33, %35, %cst_51 {dimension_numbers = #tpu.dot_dimension_numbers<[1], [0], [0], [1], [0, 0, 1, 1], [], []>} : vector<128x48xbf16>, vector<48x16xbf16>, vector<128x16xf32> -> vector<128x16xf32>
    %c0_52 = arith.constant 0 : index
    %c0_53 = arith.constant 0 : index
    %37 = vector.load %arg12[%c0_52, %c0_53] : memref<128x16xf32, #tpu.memory_space<vmem>>, vector<128x16xf32>
    tpu.vector_store %arg12[%c0_52, %c0_53], %36 {strides = array<i32>} : memref<128x16xf32, #tpu.memory_space<vmem>>, vector<128x16xf32>,
    %c1_54 = arith.constant 1 : index
    %c0_55 = arith.constant 0 : index
    %c0_56 = arith.constant 0 : index
    %38 = vector.load %arg10[%c1_54, %c0_55, %c0_56] : memref<10x18x16xbf16, #tpu.memory_space<vmem>>, vector<8x16x16xbf16>
    %c1_57 = arith.constant 1 : index
    %c0_58 = arith.constant 0 : index
    %c0_59 = arith.constant 0 : index
    %c0_60 = arith.constant 0 : index
    %39 = vector.load %arg11[%c1_57, %c0_58, %c0_59, %c0_60] : memref<2x8x16x48xbf16, #tpu.memory_space<vmem>>, vector<1x8x16x16xbf16>
    %40 = vector.shape_cast %39 : vector<1x8x16x16xbf16> to vector<8x16x16xbf16>
    %41 = vector.shape_cast %38 : vector<8x16x16xbf16> to vector<1x8x16x16xbf16>
    tpu.vector_store %arg11[%c1_57, %c0_58, %c0_59, %c0_60], %41 {strides = array<i32>} : memref<2x8x16x48xbf16, #tpu.memory_space<vmem>>, vector<1x8x16x16xbf16>,
    %c1_61 = arith.constant 1 : index
    %c1_62 = arith.constant 1 : index
    %c0_63 = arith.constant 0 : index
    %42 = vector.load %arg10[%c1_61, %c1_62, %c0_63] : memref<10x18x16xbf16, #tpu.memory_space<vmem>>, vector<8x16x16xbf16>
    %c1_64 = arith.constant 1 : index
    %c0_65 = arith.constant 0 : index
    %c0_66 = arith.constant 0 : index
    %c16_67 = arith.constant 16 : index
    %43 = vector.load %arg11[%c1_64, %c0_65, %c0_66, %c16_67] : memref<2x8x16x48xbf16, #tpu.memory_space<vmem>>, vector<1x8x16x16xbf16>
    %44 = vector.shape_cast %43 : vector<1x8x16x16xbf16> to vector<8x16x16xbf16>
    %45 = vector.shape_cast %42 : vector<8x16x16xbf16> to vector<1x8x16x16xbf16>
    tpu.vector_store %arg11[%c1_64, %c0_65, %c0_66, %c16_67], %45 {strides = array<i32>} : memref<2x8x16x48xbf16, #tpu.memory_space<vmem>>, vector<1x8x16x16xbf16>,
    %c1_68 = arith.constant 1 : index
    %c2_69 = arith.constant 2 : index
    %c0_70 = arith.constant 0 : index
    %46 = vector.load %arg10[%c1_68, %c2_69, %c0_70] : memref<10x18x16xbf16, #tpu.memory_space<vmem>>, vector<8x16x16xbf16>
    %c1_71 = arith.constant 1 : index
    %c0_72 = arith.constant 0 : index
    %c0_73 = arith.constant 0 : index
    %c32_74 = arith.constant 32 : index
    %47 = vector.load %arg11[%c1_71, %c0_72, %c0_73, %c32_74] : memref<2x8x16x48xbf16, #tpu.memory_space<vmem>>, vector<1x8x16x16xbf16>
    %48 = vector.shape_cast %47 : vector<1x8x16x16xbf16> to vector<8x16x16xbf16>
    %49 = vector.shape_cast %46 : vector<8x16x16xbf16> to vector<1x8x16x16xbf16>
    tpu.vector_store %arg11[%c1_71, %c0_72, %c0_73, %c32_74], %49 {strides = array<i32>} : memref<2x8x16x48xbf16, #tpu.memory_space<vmem>>, vector<1x8x16x16xbf16>,
    %c1_75 = arith.constant 1 : index
    %c0_76 = arith.constant 0 : index
    %c0_77 = arith.constant 0 : index
    %c0_78 = arith.constant 0 : index
    %50 = vector.load %arg11[%c1_75, %c0_76, %c0_77, %c0_78] : memref<2x8x16x48xbf16, #tpu.memory_space<vmem>>, vector<1x8x16x48xbf16>
    %51 = vector.shape_cast %50 : vector<1x8x16x48xbf16> to vector<8x16x48xbf16>
    %52 = vector.shape_cast %51 : vector<8x16x48xbf16> to vector<128x48xbf16>
    %c1_79 = arith.constant 1 : index
    %c0_80 = arith.constant 0 : index
    %c0_81 = arith.constant 0 : index
    %53 = vector.load %arg5[%c1_79, %c0_80, %c0_81] : memref<3x48x16xbf16, #tpu.memory_space<vmem>>, vector<1x48x16xbf16>
    %54 = vector.shape_cast %53 : vector<1x48x16xbf16> to vector<48x16xbf16>
    %cst_82 = arith.constant dense<0.000000e+00> : vector<128x16xf32>
    %55 = tpu.matmul %52, %54, %cst_82 {dimension_numbers = #tpu.dot_dimension_numbers<[1], [0], [0], [1], [0, 0, 1, 1], [], []>} : vector<128x48xbf16>, vector<48x16xbf16>, vector<128x16xf32> -> vector<128x16xf32>
    %c0_83 = arith.constant 0 : index
    %c0_84 = arith.constant 0 : index
    %56 = vector.load %arg12[%c0_83, %c0_84] : memref<128x16xf32, #tpu.memory_space<vmem>>, vector<128x16xf32>
    %57 = arith.addf %56, %55 : vector<128x16xf32>
    %c0_85 = arith.constant 0 : index
    %c0_86 = arith.constant 0 : index
    %58 = vector.load %arg12[%c0_85, %c0_86] : memref<128x16xf32, #tpu.memory_space<vmem>>, vector<128x16xf32>
    tpu.vector_store %arg12[%c0_85, %c0_86], %57 {strides = array<i32>} : memref<128x16xf32, #tpu.memory_space<vmem>>, vector<128x16xf32>,
    %c2_87 = arith.constant 2 : index
    %c0_88 = arith.constant 0 : index
    %c0_89 = arith.constant 0 : index
    %59 = vector.load %arg10[%c2_87, %c0_88, %c0_89] : memref<10x18x16xbf16, #tpu.memory_space<vmem>>, vector<8x16x16xbf16>
    %c0_90 = arith.constant 0 : index
    %c0_91 = arith.constant 0 : index
    %c0_92 = arith.constant 0 : index
    %c0_93 = arith.constant 0 : index
    %60 = vector.load %arg11[%c0_90, %c0_91, %c0_92, %c0_93] : memref<2x8x16x48xbf16, #tpu.memory_space<vmem>>, vector<1x8x16x16xbf16>
    %61 = vector.shape_cast %60 : vector<1x8x16x16xbf16> to vector<8x16x16xbf16>
    %62 = vector.shape_cast %59 : vector<8x16x16xbf16> to vector<1x8x16x16xbf16>
    tpu.vector_store %arg11[%c0_90, %c0_91, %c0_92, %c0_93], %62 {strides = array<i32>} : memref<2x8x16x48xbf16, #tpu.memory_space<vmem>>, vector<1x8x16x16xbf16>,
    %c2_94 = arith.constant 2 : index
    %c1_95 = arith.constant 1 : index
    %c0_96 = arith.constant 0 : index
    %63 = vector.load %arg10[%c2_94, %c1_95, %c0_96] : memref<10x18x16xbf16, #tpu.memory_space<vmem>>, vector<8x16x16xbf16>
    %c0_97 = arith.constant 0 : index
    %c0_98 = arith.constant 0 : index
    %c0_99 = arith.constant 0 : index
    %c16_100 = arith.constant 16 : index
    %64 = vector.load %arg11[%c0_97, %c0_98, %c0_99, %c16_100] : memref<2x8x16x48xbf16, #tpu.memory_space<vmem>>, vector<1x8x16x16xbf16>
    %65 = vector.shape_cast %64 : vector<1x8x16x16xbf16> to vector<8x16x16xbf16>
    %66 = vector.shape_cast %63 : vector<8x16x16xbf16> to vector<1x8x16x16xbf16>
    tpu.vector_store %arg11[%c0_97, %c0_98, %c0_99, %c16_100], %66 {strides = array<i32>} : memref<2x8x16x48xbf16, #tpu.memory_space<vmem>>, vector<1x8x16x16xbf16>,
    %c2_101 = arith.constant 2 : index
    %c2_102 = arith.constant 2 : index
    %c0_103 = arith.constant 0 : index
    %67 = vector.load %arg10[%c2_101, %c2_102, %c0_103] : memref<10x18x16xbf16, #tpu.memory_space<vmem>>, vector<8x16x16xbf16>
    %c0_104 = arith.constant 0 : index
    %c0_105 = arith.constant 0 : index
    %c0_106 = arith.constant 0 : index
    %c32_107 = arith.constant 32 : index
    %68 = vector.load %arg11[%c0_104, %c0_105, %c0_106, %c32_107] : memref<2x8x16x48xbf16, #tpu.memory_space<vmem>>, vector<1x8x16x16xbf16>
    %69 = vector.shape_cast %68 : vector<1x8x16x16xbf16> to vector<8x16x16xbf16>
    %70 = vector.shape_cast %67 : vector<8x16x16xbf16> to vector<1x8x16x16xbf16>
    tpu.vector_store %arg11[%c0_104, %c0_105, %c0_106, %c32_107], %70 {strides = array<i32>} : memref<2x8x16x48xbf16, #tpu.memory_space<vmem>>, vector<1x8x16x16xbf16>,
    %c0_108 = arith.constant 0 : index
    %c0_109 = arith.constant 0 : index
    %c0_110 = arith.constant 0 : index
    %c0_111 = arith.constant 0 : index
    %71 = vector.load %arg11[%c0_108, %c0_109, %c0_110, %c0_111] : memref<2x8x16x48xbf16, #tpu.memory_space<vmem>>, vector<1x8x16x48xbf16>
    %72 = vector.shape_cast %71 : vector<1x8x16x48xbf16> to vector<8x16x48xbf16>
    %73 = vector.shape_cast %72 : vector<8x16x48xbf16> to vector<128x48xbf16>
    %c2_112 = arith.constant 2 : index
    %c0_113 = arith.constant 0 : index
    %c0_114 = arith.constant 0 : index
    %74 = vector.load %arg5[%c2_112, %c0_113, %c0_114] : memref<3x48x16xbf16, #tpu.memory_space<vmem>>, vector<1x48x16xbf16>
    %75 = vector.shape_cast %74 : vector<1x48x16xbf16> to vector<48x16xbf16>
    %cst_115 = arith.constant dense<0.000000e+00> : vector<128x16xf32>
    %76 = tpu.matmul %73, %75, %cst_115 {dimension_numbers = #tpu.dot_dimension_numbers<[1], [0], [0], [1], [0, 0, 1, 1], [], []>} : vector<128x48xbf16>, vector<48x16xbf16>, vector<128x16xf32> -> vector<128x16xf32>
    %c0_116 = arith.constant 0 : index
    %c0_117 = arith.constant 0 : index
    %77 = vector.load %arg12[%c0_116, %c0_117] : memref<128x16xf32, #tpu.memory_space<vmem>>, vector<128x16xf32>
    %78 = arith.addf %77, %76 : vector<128x16xf32>
    %c0_118 = arith.constant 0 : index
    %c0_119 = arith.constant 0 : index
    %79 = vector.load %arg12[%c0_118, %c0_119] : memref<128x16xf32, #tpu.memory_space<vmem>>, vector<128x16xf32>
    tpu.vector_store %arg12[%c0_118, %c0_119], %78 {strides = array<i32>} : memref<128x16xf32, #tpu.memory_space<vmem>>, vector<128x16xf32>,
    %c0_120 = arith.constant 0 : index
    %c0_121 = arith.constant 0 : index
    %80 = vector.load %arg12[%c0_120, %c0_121] : memref<128x16xf32, #tpu.memory_space<vmem>>, vector<128x16xf32>
    %c0_122 = arith.constant 0 : index
    %c0_123 = arith.constant 0 : index
    %81 = vector.load %arg6[%c0_122, %c0_123] : memref<1x16xf32, #tpu.memory_space<vmem>>, vector<1x16xf32>
    %82 = vector.broadcast %81 : vector<1x16xf32> to vector<128x16xf32>
    %83 = arith.addf %80, %82 : vector<128x16xf32>
    %cst_124 = arith.constant 0.000000e+00 : f32
    %84 = vector.broadcast %cst_124 : f32 to vector<128x16xf32>
    %85 = arith.maximumf %83, %84 : vector<128x16xf32>
    %86 = arith.truncf %85 : vector<128x16xf32> to vector<128x16xbf16>
    %c0_125 = arith.constant 0 : index
    %c0_126 = arith.constant 0 : index
    %87 = vector.load %arg7[%c0_125, %c0_126] : memref<16x15xbf16, #tpu.memory_space<vmem>>, vector<16x15xbf16>
    %cst_127 = arith.constant dense<0.000000e+00> : vector<128x15xf32>
    %88 = tpu.matmul %86, %87, %cst_127 {dimension_numbers = #tpu.dot_dimension_numbers<[1], [0], [0], [1], [0, 0, 1, 1], [], []>} : vector<128x16xbf16>, vector<16x15xbf16>, vector<128x15xf32> -> vector<128x15xf32>
    %c0_128 = arith.constant 0 : index
    %c0_129 = arith.constant 0 : index
    %89 = vector.load %arg8[%c0_128, %c0_129] : memref<1x15xf32, #tpu.memory_space<vmem>>, vector<1x15xf32>
    %90 = vector.broadcast %89 : vector<1x15xf32> to vector<128x15xf32>
    %91 = arith.addf %88, %90 : vector<128x15xf32>
    %c0_130 = arith.constant 0 : index
    %c0_131 = arith.constant 0 : index
    %c0_132 = arith.constant 0 : index
    %92 = vector.load %arg9[%c0_130, %c0_131, %c0_132] : memref<1x128x15xf32, #tpu.memory_space<vmem>>, vector<1x128x15xf32>
    %93 = vector.shape_cast %92 : vector<1x128x15xf32> to vector<128x15xf32>
    %94 = vector.shape_cast %91 : vector<128x15xf32> to vector<1x128x15xf32>
    tpu.vector_store %arg9[%c0_130, %c0_131, %c0_132], %94 {strides = array<i32>} : memref<1x128x15xf32, #tpu.memory_space<vmem>>, vector<1x128x15xf32>,
    return
  }
  func.func @transform_0(%arg0: i32, %arg1: i32) -> (i32, i32, i32, i32) {
    %c0_i32 = arith.constant 0 : i32
    %c0_i32_0 = arith.constant 0 : i32
    %c0_i32_1 = arith.constant 0 : i32
    return %arg0, %arg1, %c0_i32, %c0_i32_0 : i32, i32, i32, i32
  }
  func.func @transform_1(%arg0: i32, %arg1: i32) -> (i32, i32, i32, i32) {
    %c8_i32 = arith.constant 8 : i32
    %0 = arith.muli %arg1, %c8_i32 : i32
    %c1_i32 = arith.constant 1 : i32
    %1 = arith.subi %0, %c1_i32 : i32
    %c0_i32 = arith.constant 0 : i32
    %2 = arith.maxsi %1, %c0_i32 : i32
    %c0_i32_0 = arith.constant 0 : i32
    %c0_i32_1 = arith.constant 0 : i32
    %c0_i32_2 = arith.constant 0 : i32
    return %arg0, %2, %c0_i32_0, %c0_i32_1 : i32, i32, i32, i32
  }
  func.func @transform_2(%arg0: i32, %arg1: i32) -> (i32, i32, i32, i32) {
    %c8_i32 = arith.constant 8 : i32
    %0 = arith.muli %arg1, %c8_i32 : i32
    %c8_i32_0 = arith.constant 8 : i32
    %1 = arith.addi %0, %c8_i32_0 : i32
    %c15_i32 = arith.constant 15 : i32
    %2 = arith.minsi %1, %c15_i32 : i32
    %c0_i32 = arith.constant 0 : i32
    %c0_i32_1 = arith.constant 0 : i32
    %c0_i32_2 = arith.constant 0 : i32
    return %arg0, %2, %c0_i32, %c0_i32_1 : i32, i32, i32, i32
  }
  func.func @transform_3(%arg0: i32, %arg1: i32) -> (i32, i32, i32) {
    %c0_i32 = arith.constant 0 : i32
    %c0_i32_0 = arith.constant 0 : i32
    %c0_i32_1 = arith.constant 0 : i32
    %c0_i32_2 = arith.constant 0 : i32
    return %c0_i32, %c0_i32_0, %c0_i32_1 : i32, i32, i32
  }
  func.func @transform_4(%arg0: i32, %arg1: i32) -> (i32, i32) {
    %c0_i32 = arith.constant 0 : i32
    %c0_i32_0 = arith.constant 0 : i32
    %c0_i32_1 = arith.constant 0 : i32
    return %c0_i32, %c0_i32_0 : i32, i32
  }
  func.func @transform_5(%arg0: i32, %arg1: i32) -> (i32, i32) {
    %c0_i32 = arith.constant 0 : i32
    %c0_i32_0 = arith.constant 0 : i32
    %c0_i32_1 = arith.constant 0 : i32
    return %c0_i32, %c0_i32_0 : i32, i32
  }
  func.func @transform_6(%arg0: i32, %arg1: i32) -> (i32, i32) {
    %c0_i32 = arith.constant 0 : i32
    %c0_i32_0 = arith.constant 0 : i32
    %c0_i32_1 = arith.constant 0 : i32
    return %c0_i32, %c0_i32_0 : i32, i32
  }
  func.func @transform_7(%arg0: i32, %arg1: i32) -> (i32, i32, i32) {
    %c0_i32 = arith.constant 0 : i32
    %c0_i32_0 = arith.constant 0 : i32
    return %arg0, %arg1, %c0_i32 : i32, i32, i32
  }
}

</mosaic_0001>

<bundles_post_ra>
// kernel: tpu_custom_call.1
= control target key start
LH: loop header
LB: loop body
LE: loop exit
PB: predicated region body
PF: predicated region fallthrough
CT: control target
= control target key end

     0   :  { %s4844_s0 = inlined_call_operand.hbm [shape: bf16[2,16,16,16], index: 0, kind: input, shape index: {}]   ;;  %s4845_s1 = inlined_call_operand.hbm [shape: bf16[2,16,16,16], index: 1, kind: input, shape index: {}]   ;;  %s4846_s2 = inlined_call_operand.hbm [shape: bf16[2,16,16,16], index: 2, kind: input, shape index: {}]   ;;  %s4847_s3 = inlined_call_operand.vmem [shape: bf16[3,48,16], index: 3, kind: input, shape index: {}]   ;;  %s4848_s4 = inlined_call_operand.vmem [shape: f32[1,16], index: 4, kind: input, shape index: {}]   ;;  %s4849_s5 = inlined_call_operand.vmem [shape: bf16[16,15], index: 5, kind: input, shape index: {}]   ;;  %s4850_s6 = inlined_call_operand.vmem [shape: f32[1,15], index: 6, kind: input, shape index: {}]   ;;  %s4851_s7 = inlined_call_operand.vmem [shape: f32[2,256,15], index: 7, kind: output, shape index: {}]  }
   0x1   :  { %4873 = sst [smem:[#allocation23_spill]] %s4844_s0 }
   0x2   :  { %4874 = sst [smem:[#allocation24_spill]] %s4845_s1 }
   0x3   :  { %4875 = sst [smem:[#allocation25_spill]] %s4846_s2 }
   0x4   :  { %4876 = sst [smem:[#allocation26_spill]] %s4847_s3 }
   0x5   :  { %4877 = sst [smem:[#allocation27_spill]] %s4848_s4 }
   0x6   :  { %4878 = sst [smem:[#allocation28_spill]] %s4849_s5 }
   0x7   :  { %4879 = sst [smem:[#allocation29_spill]] %s4850_s6 }
   0x8   :  { %4880 = sst [smem:[#allocation30_spill]] %s4851_s7 }
   0x9   :  { %12 = vsyncpa [#allocation6], 0 }
   0xa   :  { %14 = vsyncpa [#allocation6 + $0x1], 0 }
   0xb   :  { %15 = vsyncpa [#allocation8], 0 }
   0xc   :  { %17 = vsyncpa [#allocation8 + $0x1], 0  ;;  %s3938_s24 = smov 0   ;;  %s3940_s25 = smov 0  }
   0xd   :  { %s3942_s26 = smov 0   ;;  %s3944_s27 = smov 0  }
   0xe   :  { %s3946_s28 = smov 0   ;;  %s3948_s29 = smov 0  }
   0xf   :  { %s3950_s30 = smov 0   ;;  %s3952_s8 = smov 0  }
  0x10   :  { %s3954_s9 = smov 0   ;;  %s3956_s10 = smov 0  }
  0x11   :  { %s3958_s11 = smov 0   ;;  %s3960_s12 = smov 0  }
  0x12   :  { %s3962_s13 = smov 0   ;;  %s3964_s14 = smov 0  }
  0x13 LB: > { %4881 = sst [smem:[#allocation13_spill]] %s3851_s28  ;;  %s4852_s15 = sadd.s32 4294967295, %s3887_s14   ;;  %s3887_s14 = sphi %s3964_s14, %s23_s14   ;;  %s3883_s13 = sphi %s3962_s13, %s4953_s13   ;;  %s3879_s12 = sphi %s3960_s12, %s4942_s12   ;;  %s3875_s11 = sphi %s3958_s11, %s4941_s11   ;;  %s3871_s10 = sphi %s3956_s10, %s4940_s10   ;;  %s3867_s9 = sphi %s3954_s9, %s4952_s9   ;;  %s3863_s8 = sphi %s3952_s8, %s4951_s8   ;;  %s3859_s30 = sphi %s3950_s30, %s4950_s30   ;;  %s3855_s29 = sphi %s3948_s29, %s4949_s29   ;;  %s3851_s28 = sphi %s3946_s28, %s4948_s28   ;;  %s3847_s27 = sphi %s3944_s27, %s4938_s27   ;;  %s3843_s26 = sphi %s3942_s26, %s4947_s26   ;;  %s3839_s25 = sphi %s3940_s25, %s4946_s25   ;;  %s3835_s24 = sphi %s3938_s24, %s4945_s24  }
  0x14   : > { %4882 = sst [smem:[#allocation14_spill]] %s3871_s10  ;;  %s32_s16 = sadd.s32 1, %s3879_s12 }
  0x15   : > { %4883 = sst [smem:[#allocation15_spill]] %s3875_s11  ;;  %p33_p0 = scmp.ge.s32.totalorder %s32_s16, 2 }
  0x16   : > { %4884 = sst [smem:[#allocation16_spill]] %s3879_s12  ;;  %s35_s17 = sadd.s32 1, %s3883_s13 }
  0x17   : > { %4885 = sst [smem:[#allocation17_spill]] %s3883_s13  ;;  %p4864_p1 = scmp.eq.s32.totalorder %s3887_s14, 0 }
  0x18   : > { %p4014_p2 = scmp.eq.s32.totalorder %s4852_s15, 0  ;;  %s4955_s16 = smov (%p33_p0, %s32_s16), 0 }
  0x19   : > { %4887 = sst [smem:[#allocation18_spill]] %s4955_s16  ;;  %s4957_s17 = smov (!%p33_p0, %s35_s17), %s3883_s13 }
  0x1a   : > { %s40_s19 = ssub.s32 %s3879_s12, %s4955_s16  ;;  %s3072_s20 = sshll.u32 %s3879_s12, 3 }
  0x1b   : > { %p37_p3 = scmp.ge.s32.totalorder %s4957_s17, 2  ;;  %s3073_s21 = sadd.s32 4294967295, %s3072_s20 }
  0x1c   : > { %p69_p4 = scmp.gt.s32.totalorder %s3073_s21, 0  ;;  %s3074_s22 = sshll.u32 %s4955_s16, 3 }
  0x1d   : > { %s4959_s17 = smov (%p37_p3, %s4957_s17), 0  ;;  %s3075_s15 = sadd.s32 4294967295, %s3074_s22 }
  0x1e   : > { %4888 = sst [smem:[#allocation19_spill]] %s4959_s17  ;;  %s4961_s21 = smov (!%p69_p4, %s3073_s21), 0 }
  0x1f   : > { %s4029_s23 = ssub.s32 %s3883_s13, %s4959_s17  ;;  %p73_p5 = scmp.gt.s32.totalorder %s3075_s15, 0 }
  0x20   : > { %4889 = sst [smem:[#allocation20_spill]] %s4029_s23  ;;  %s4032_s6 = sor.u32 %s40_s19, %s4029_s23 }
  0x21   : > { %s80_s4 = sadd.s32 1, %s3855_s29  ;;  %s4963_s15 = smov (!%p73_p5, %s3075_s15), 0 }
  0x22   : > { %p87_p7 = scmp.ne.s32.totalorder %s3855_s29, %s3851_s28  ;;  %p93_p8 = scmp.ne.s32.totalorder %s3851_s28, %s3847_s27 }
  0x23   : > { %s76_s16 = ssub.s32 %s4961_s21, %s4963_s15  ;;  %s4040_s17 = sadd.s32 8, %s3072_s20 }
  0x24   : > { %s77_s5 = sor.u32 %s76_s16, %s4029_s23  ;;  %p4045_p9 = por %p87_p7, %p4864_p1 }
  0x25   : > { %p78_p10 = scmp.eq.s32.totalorder %s77_s5, 0  ;;  %p4051_p11 = por %p93_p8, %p4014_p2 }
  0x26   : > { %s4056_s27 = sadd.s32 8, %s3074_s22  ;;  %p4863_p0 = scmp.lt.s32.totalorder %s3887_s14, 4 }
  0x27   : > { %s4891_s3 = scalar_select %p4051_p11, 1, 0 }
  0x28   : > { %s4059_s15 = scalar_select %p78_p10, %s3855_s29, %s80_s4  }
  0x29   : > { %4892 = sst [smem:[#allocation21_spill]] %s4891_s3  ;;  %s4064_s16 = sshll.u32 %s3883_s13, 5 }
  0x2a   : > { %s301_s5 = sand.u32 1, %s3887_s14   ;;  %s303_s20 = sand.u32 1, %s3855_s29  }
  0x2b   : > { %s3085_s7 = sshll.u32 %s303_s20, 3  ;;  %s3088_s11 = sshll.u32 %s4961_s21, 1 }
  0x2c   : > { %s315_s10 = sadd.s32 %s3088_s11, %s4064_s16  ;;  %s305_s3 = scalar_lea.vmem [#allocation7], %s3085_s7 }
  0x2d   : > { %s318_s28 = sshll.u32 %s305_s3, 4  ;;  %s3090_s2 = sshll.u32 %s315_s10, 6  ;;  %s4069_s28 = int_to_ptr.vmem [resolvable:$true] %s318_s28 }
  0x2e   : > { %s4893_s1 = sld [smem:[#allocation24_spill]]  ;;  %p4080_p3 = pnand %p4863_p0, %p4045_p9 }
  0x2f   : > { %s4086_s3 = scalar_lea.sflag [#allocation8], %s301_s5 }
  0x30   : > { %p3677_p8 = pneg %p4080_p3 }
  0x34   : > { %s4074_s4 = scalar_lea.hbm %s4893_s1, %s3090_s2  ;;  %s3680_s11 = scalar_lea.hbm %s4893_s1, 4096 }
  0x35   : > { %s3675_s7 = scalar_lea.hbm %s4074_s4, 128  ;;  %p3681_p9 = scmp.lt.u32.totalorder %s4074_s4, %s4893_s1 }
  0x36   : > { %p3676_p7 = scmp.ne.s32.totalorder %s4074_s4, %s3675_s7  ;;  %p3682_p12 = scmp.lt.u32.totalorder %s3680_s11, %s3675_s7 }
  0x37   : > { %p3684_p1 = scmp.lt.u32.totalorder %s3675_s7, %s4074_s4 }
  0x38   : > { %p3678_p10 = pnand %p3677_p8, %p3676_p7  ;;  %p3683_p0 = por %p3682_p12, %p3681_p9 }
  0x3a   : > { %p3679_p13 = pneg %p3678_p10  ;;  %p3685_p6 = por %p3684_p1, %p3683_p0 }
  0x3c   : > { %p3686_p4 = pnand %p3685_p6, %p3679_p13 }
  0x3e   : > { %3689 = shalt.err (!%p3686_p4)
}
  0x3f   : > { %s3690_s19 = scalar_lea.vmem %s4069_s28, 128  ;;  %s3889_s5 = smov [#allocation7]  }
  0x40   : > { %p3691_p7 = scmp.ne.s32.totalorder %s4069_s28, %s3690_s19  ;;  %s3695_s22 = sshll.u32 %s3889_s5, 4  ;;  %s3696_s22 = int_to_ptr.vmem [resolvable:$false] %s3695_s22 }
  0x41   : > { %s3697_s2 = scalar_lea.vmem %s3696_s22, 256  ;;  %p3698_p11 = scmp.lt.s32.totalorder %s4069_s28, %s3696_s22 }
  0x42   : > { %p3693_p10 = pnand %p3691_p7, %p3677_p8  ;;  %p3699_p12 = scmp.lt.s32.totalorder %s3697_s2, %s3690_s19 }
  0x44   : > { %p3694_p5 = pneg %p3693_p10  ;;  %p3700_p9 = por %p3699_p12, %p3698_p11 }
  0x46   : > { %p3701_p1 = pnand %p3700_p9, %p3694_p5 }
  0x48   : > { %3704 = shalt.err (!%p3701_p1)
}
  0x49   : > { %s4866_s7 = smov 64   ;;  %s4868_s10 = smov 4  }
  0x4a   : > { %3422 = dma.hbm_to_vmem [thread:$0]  (!%p4080_p3), %s4074_s4, 128, %s4069_s28, %s4086_s3, %s4866_s7, %s4866_s7, %s4868_s10  }
  0x4b   : > { %p4895_p6 = scmp.lt.s32.totalorder %s3887_s14, 5  ;;  %p4896_p11 = scmp.ge.s32.totalorder %s3887_s14, 1 }
  0x4c   : > { %s44_s21 = sadd.s32 1, %s3867_s9  ;;  %p51_p0 = scmp.ne.s32.totalorder %s3867_s9, %s3863_s8 }
  0x4d   : > { %p4121_p13 = pnand %p4896_p11, %p4895_p6  ;;  %p4898_p4 = scmp.eq.s32.totalorder %s4032_s6, 0 }
  0x4e   : > { %p4900_p5 = scmp.eq.s32.totalorder %s3887_s14, 0  ;;  %p57_p7 = scmp.ne.s32.totalorder %s3863_s8, %s3859_s30 }
  0x4f   : > { %s4897_s11 = scalar_select %p4121_p13, 1, 0 }
  0x50   : > { %s4131_s23 = scalar_select %p4898_p4, %s3867_s9, %s44_s21  }
  0x51   : > { %p53_p8 = por %p4900_p5, %p51_p0  ;;  %s277_s20 = sand.u32 1, %s3867_s9  }
  0x52   : > { %4899 = sst [smem:[#allocation22_spill]] %s4131_s23  ;;  %s3283_s19 = sshll.u32 %s3879_s12, 4 }
  0x53   : > { %p4141_p10 = por %p4014_p2, %p57_p7  ;;  %s3080_s4 = sshll.u32 %s277_s20, 6 }
  0x54   : > { %s288_s5 = sadd.s32 %s3283_s19, %s4064_s16  ;;  %s4902_s0 = sld [smem:[#allocation23_spill]] }
  0x55   : > { %s4901_s28 = scalar_select %p4141_p10, 1, 0 }
  0x56   : > { %s3084_s22 = sshll.u32 %s288_s5, 6  ;;  %s281_s6 = scalar_lea.vmem [#allocation5], %s3080_s4 }
  0x57   : > { %s291_s30 = sshll.u32 %s281_s6, 4  ;;  %p4903_p3 = scmp.lt.s32.totalorder %s3887_s14, 4  ;;  %s4151_s30 = int_to_ptr.vmem [resolvable:$true] %s291_s30 }
  0x58   : > { %s4159_s19 = scalar_lea.sflag [#allocation6], %s277_s20 }
  0x59   : > { %p4155_p12 = pnand %p4903_p3, %p53_p8 }
  0x5a   : > { %s4149_s10 = scalar_lea.hbm %s4902_s0, %s3084_s22  ;;  %s3710_s22 = scalar_lea.hbm %s4902_s0, 4096 }
  0x5b   : > { %s3705_s7 = scalar_lea.hbm %s4149_s10, 1024  ;;  %p3707_p1 = pneg %p4155_p12 }
  0x5c   : > { %p3706_p9 = scmp.ne.s32.totalorder %s4149_s10, %s3705_s7  ;;  %p3711_p0 = scmp.lt.u32.totalorder %s4149_s10, %s4902_s0 }
  0x5d   : > { %p3712_p4 = scmp.lt.u32.totalorder %s3710_s22, %s3705_s7  ;;  %p3714_p8 = scmp.lt.u32.totalorder %s3705_s7, %s4149_s10 }
  0x5e   : > { %p3708_p6 = pnand %p3707_p1, %p3706_p9 }
  0x5f   : > { %p3713_p5 = por %p3712_p4, %p3711_p0 }
  0x60   : > { %p3709_p11 = pneg %p3708_p6 }
  0x61   : > { %p3715_p7 = por %p3714_p8, %p3713_p5 }
  0x63   : > { %p3716_p3 = pnand %p3715_p7, %p3709_p11 }
  0x65   : > { %3719 = shalt.err (!%p3716_p3)
}
  0x66   : > { %s3720_s20 = scalar_lea.vmem %s4151_s30, 1024  ;;  %s3892_s4 = smov [#allocation5]  }
  0x67   : > { %p3721_p9 = scmp.ne.s32.totalorder %s4151_s30, %s3720_s20  ;;  %s3725_s5 = sshll.u32 %s3892_s4, 4  ;;  %s3726_s5 = int_to_ptr.vmem [resolvable:$false] %s3725_s5 }
  0x68   : > { %s3727_s2 = scalar_lea.vmem %s3726_s5, 2048  ;;  %p3728_p13 = scmp.lt.s32.totalorder %s4151_s30, %s3726_s5 }
  0x69   : > { %p3723_p6 = pnand %p3721_p9, %p3707_p1  ;;  %p3729_p0 = scmp.lt.s32.totalorder %s3727_s2, %s3720_s20 }
  0x6b   : > { %p3724_p10 = pneg %p3723_p6  ;;  %p3730_p4 = por %p3729_p0, %p3728_p13 }
  0x6d   : > { %p3731_p5 = pnand %p3730_p4, %p3724_p10 }
  0x6f   : > { %3734 = shalt.err (!%p3731_p5)
}
  0x70   : > { %s4905_s7 = smov 4   ;;  %s4906_s22 = smov 64  }
  0x71   : > { %s4907_s6 = sld [smem:[#allocation20_spill]]  ;;  %s116_s21 = sadd.s32 1, %s3843_s26 }
  0x72   : > { %3419 = dma.hbm_to_vmem [thread:$0]  (!%p4155_p12), %s4149_s10, 1024, %s4151_s30, %s4159_s19, %s4906_s22, %s4906_s22, %s4905_s7  }
  0x73   : > { %p4908_p13 = scmp.lt.s32.totalorder %s4040_s17, 15  ;;  %p4909_p10 = scmp.lt.s32.totalorder %s4056_s27, 15 }
  0x74   : > { %p123_p1 = scmp.ne.s32.totalorder %s3843_s26, %s3839_s25  ;;  %p129_p11 = scmp.ne.s32.totalorder %s3839_s25, %s3835_s24 }
  0x75   : > { %s4965_s17 = smov (!%p4908_p13, %s4040_s17), 15  ;;  %s4967_s27 = smov (!%p4909_p10, %s4056_s27), 15 }
  0x76   : > { %s112_s20 = ssub.s32 %s4965_s17, %s4967_s27  ;;  %s330_s4 = sand.u32 1, %s3843_s26  }
  0x77   : > { %s113_s5 = sor.u32 %s112_s20, %s4907_s6  ;;  %p4910_p8 = scmp.eq.s32.totalorder %s3887_s14, 0 }
  0x78   : > { %p114_p3 = scmp.eq.s32.totalorder %s113_s5, 0  ;;  %p4207_p9 = por %p129_p11, %p4014_p2 }
  0x79   : > { %p125_p7 = por %p123_p1, %p4910_p8  ;;  %s3091_s10 = sshll.u32 %s330_s4, 3 }
  0x7a   : > { %s3093_s30 = sshll.u32 %s4965_s17, 1  ;;  %s332_s13 = scalar_lea.vmem [#allocation9], %s3091_s10 }
  0x7b   : > { %s4212_s19 = scalar_select %p114_p3, %s3843_s26, %s116_s21  }
  0x7c   : > { %s342_s0 = sadd.s32 %s3093_s30, %s4064_s16  ;;  %s345_s24 = sshll.u32 %s332_s13, 4  ;;  %s4220_s24 = int_to_ptr.vmem [resolvable:$true] %s345_s24 }
  0x7d   : > { %s3095_s1 = sshll.u32 %s342_s0, 6  ;;  %s4912_s23 = sld [smem:[#allocation25_spill]] }
  0x7e   : > { %p4913_p2 = scmp.lt.s32.totalorder %s3887_s14, 4 }
  0x80   : > { %p4224_p12 = pnand %p4913_p2, %p125_p7 }
  0x82   : > { %p3737_p0 = pneg %p4224_p12 }
  0x83   : > { %s4218_s6 = scalar_lea.hbm %s4912_s23, %s3095_s1  ;;  %s3740_s13 = scalar_lea.hbm %s4912_s23, 4096 }
  0x84   : > { %s3735_s0 = scalar_lea.hbm %s4218_s6, 128  ;;  %p3741_p13 = scmp.lt.u32.totalorder %s4218_s6, %s4912_s23 }
  0x85   : > { %p3736_p6 = scmp.ne.s32.totalorder %s4218_s6, %s3735_s0  ;;  %p3742_p10 = scmp.lt.u32.totalorder %s3740_s13, %s3735_s0 }
  0x86   : > { %p3744_p11 = scmp.lt.u32.totalorder %s3735_s0, %s4218_s6 }
  0x87   : > { %p3738_p4 = pnand %p3737_p0, %p3736_p6  ;;  %p3743_p1 = por %p3742_p10, %p3741_p13 }
  0x89   : > { %p3739_p5 = pneg %p3738_p4  ;;  %p3745_p8 = por %p3744_p11, %p3743_p1 }
  0x8b   : > { %p3746_p7 = pnand %p3745_p8, %p3739_p5 }
  0x8d   : > { %3749 = shalt.err (!%p3746_p7)
}
  0x8e   : > { %s3750_s21 = scalar_lea.vmem %s4220_s24, 128  ;;  %s3893_s20 = smov [#allocation9]  }
  0x8f   : > { %p3751_p3 = scmp.ne.s32.totalorder %s4220_s24, %s3750_s21  ;;  %s3755_s4 = sshll.u32 %s3893_s20, 4  ;;  %s3756_s4 = int_to_ptr.vmem [resolvable:$false] %s3755_s4 }
  0x90   : > { %s3757_s5 = scalar_lea.vmem %s3756_s4, 256  ;;  %p3758_p4 = scmp.lt.s32.totalorder %s4220_s24, %s3756_s4 }
  0x91   : > { %p3753_p2 = pnand %p3751_p3, %p3737_p0  ;;  %p3759_p13 = scmp.lt.s32.totalorder %s3757_s5, %s3750_s21 }
  0x93   : > { %p3754_p6 = pneg %p3753_p2  ;;  %p3760_p10 = por %p3759_p13, %p3758_p4 }
  0x95   : > { %p3761_p1 = pnand %p3760_p10, %p3754_p6 }
  0x97   : > { %3764 = shalt.err (!%p3761_p1)
}
  0x98   : > { %3425 = dma.hbm_to_vmem [thread:$0]  (!%p4224_p12), %s4218_s6, 128, %s4220_s24, %s4086_s3, %s4906_s22, %s4906_s22, %s4905_s7  }
  0x99   : > { %p4915_p0 = scmp.ne.s32.totalorder %s4897_s11, 0 }
  0x9a   : > { %s359_s10 = sand.u32 (!%p4915_p0), 1, %s3863_s8   ;;  %p4916_p5 = scmp.ne.s32.totalorder (!%p4915_p0), %s4901_s28, 0 }
  0x9b   : > { %357 = sbr.rel (%p4915_p0) target bundleno = 933 (0x3a5), region = 48  ;;  %s3097_s30 = sshll.u32 (!%p4915_p0), %s359_s10, 6 }
  0x9c   : > { %s360_s27 = scalar_lea.sflag (!%p4915_p0), [#allocation6], %s359_s10  ;;  %s4260_s0 = scalar_lea.vmem (!%p4915_p0), [#allocation5], %s3097_s30 }
  0xa2   : > { %3822 = dma.done.wait (%p4916_p5), %s360_s27, 1024  }
  0xa3   : > { %3824 = vsyncadd (%p4916_p5), %s360_s27, 4294966272  ;;  %s4917_s17 = sadd.s32 4294967295, %s3887_s14   ;;  %s4918_s1 = sld [smem:[#allocation13_spill]] }
  0xa4   : > { %s4919_s12 = sld [smem:[#allocation21_spill]]  ;;  %s368_s3 = sand.u32 1, %s4917_s17  }
  0xa5   : > { %s369_s22 = scalar_lea.sflag [#allocation8], %s368_s3 }
  0xa9   : > { %s370_s7 = sand.u32 1, %s4918_s1  }
  0xaa   : > { %s4269_s11 = sshll.u32 %s370_s7, 3  ;;  %p4920_p12 = scmp.ne.s32.totalorder %s4919_s12, 0 }
  0xab   : > { %s372_s24 = scalar_lea.vmem [#allocation7], %s4269_s11 }
  0xac   : > { %3826 = dma.done.wait (%p4920_p12), %s369_s22, 128  }
  0xad   : > { %3828 = vsyncadd (%p4920_p12), %s369_s22, 4294967168  ;;  %s379_s28 = sand.u32 1, %s3839_s25  }
  0xae   : > { %s4277_s6 = sshll.u32 %s379_s28, 3 }
  0xaf   : > { %s381_s13 = scalar_lea.vmem [#allocation9], %s4277_s6 }
  0xb0   : > { %3830 = dma.done.wait (%p4207_p9), %s369_s22, 128  }
  0xb1   : > { %3832 = vsyncadd (%p4207_p9), %s369_s22, 4294967168  ;;  %s4921_s18 = sld [smem:[#allocation14_spill]]  ;;  %s4922_s16 = sld [smem:[#allocation15_spill]]  ;;  %vm446_vm0 = vcmask 122880   ;;  %vm447_vm1 = vsmask.f32 256 }
  0xb2   : > { %vm4289_vm2 = vmand %vm446_vm0, %vm447_vm1  ;;  %vm479_vm3 = vsmask.f32 7938  ;;  %s4925_s30 = sld [smem:[#allocation30_spill]]  ;;  %v449_v1 = vld [vmem:[#allocation2] sm:$0x1]  ;;  %vm690_vm5 = vcmask 125952  }
  0xb3   : > { %v452_v2 = vld [vmem:[#allocation2 + $0xc] sm:$0x1]  ;;  %v455_v3 = vld [vmem:[#allocation2 + $0x18] sm:$0x1]  ;;  %v450_v4 = vsel %vm4289_vm2, 0, %v449_v1  ;;  %vm4312_vm4 = vmand %vm446_vm0, %vm479_vm3 }
  0xb4   : > { %v453_v5 = vsel %vm4289_vm2, 0, %v452_v2  ;;  %v456_v6 = vsel %vm4289_vm2, 0, %v455_v3  ;;  %v458_v7 = vld [vmem:[#allocation2 + $0x24] sm:$0x1]  ;;  %451 = vst [vmem:[#allocation2] sm:$0x1] %v450_v4  ;;  %vm4351_vm7 = vmand %vm690_vm5, %vm479_vm3 }
  0xb5   : > { %454 = vst [vmem:[#allocation2 + $0xc] sm:$0x1] %v453_v5  ;;  %457 = vst [vmem:[#allocation2 + $0x18] sm:$0x1] %v456_v6  ;;  %v459_v8 = vsel %vm4289_vm2, 0, %v458_v7 }
  0xb6   : > { %v461_v9 = vld [vmem:[#allocation2 + $0x30] sm:$0x1]  ;;  %v464_v10 = vld [vmem:[#allocation2 + $0x3c] sm:$0x1]  ;;  %460 = vst [vmem:[#allocation2 + $0x24] sm:$0x1] %v459_v8 }
  0xb7   : > { %s3100_s21 = sshll.u32 %s4921_s18, 4  ;;  %p436_p11 = scmp.lt.s32.totalorder %s4922_s16, 1  ;;  %v462_v11 = vsel %vm4289_vm2, 0, %v461_v9  ;;  %v465_v12 = vsel %vm4289_vm2, 0, %v464_v10  ;;  %v467_v13 = vld [vmem:[#allocation2 + $0x48] sm:$0x1] }
  0xb8   : > { %p438_p8 = scmp.lt.s32.totalorder %s3100_s21, 31  ;;  %v470_v14 = vld [vmem:[#allocation2 + $0x54] sm:$0x1]  ;;  %463 = vst [vmem:[#allocation2 + $0x30] sm:$0x1] %v462_v11  ;;  %v468_v16 = vsel %vm4289_vm2, 0, %v467_v13 }
  0xb9   : > { %s4969_s16 = smov (!%p436_p11, %s4922_s16), 1  ;;  %466 = vst [vmem:[#allocation2 + $0x3c] sm:$0x1] %v465_v12  ;;  %v471_v17 = vsel %vm4289_vm2, 0, %v470_v14  ;;  %v473_v18 = vld [vmem:[#allocation2 + $0x60] sm:$0x1] }
  0xba   : > { %s4971_s21 = smov (!%p438_p8, %s3100_s21), 31  ;;  %s3101_s20 = sshll.u32 %s4969_s16, 5  ;;  %v476_v19 = vld [vmem:[#allocation2 + $0x6c] sm:$0x1]  ;;  %469 = vst [vmem:[#allocation2 + $0x48] sm:$0x1] %v468_v16 }
  0xbb   : > { %s441_s4 = sadd.s32 %s3101_s20, %s4971_s21  ;;  %472 = vst [vmem:[#allocation2 + $0x54] sm:$0x1] %v471_v17  ;;  %v474_v20 = vsel %vm4289_vm2, 0, %v473_v18  ;;  %v477_v21 = vsel %vm4289_vm2, 0, %v476_v19  ;;  %v481_v22 = vld [vmem:[#allocation2 + $0x8] sm:$0x1] }
  0xbc   : > { %s3102_s2 = sshll.u32 %s441_s4, 3  ;;  %v484_v23 = vld [vmem:[#allocation2 + $0x14] sm:$0x1]  ;;  %475 = vst [vmem:[#allocation2 + $0x60] sm:$0x1] %v474_v20  ;;  %v482_v24 = vsel %vm4312_vm4, 0, %v481_v22 }
  0xbd   : > { %s4296_s27 = scalar_lea.vmem %s4925_s30, %s3102_s2  ;;  %478 = vst [vmem:[#allocation2 + $0x6c] sm:$0x1] %v477_v21  ;;  %v485_v25 = vsel %vm4312_vm4, 0, %v484_v23  ;;  %v487_v26 = vld [vmem:[#allocation2 + $0x20] sm:$0x1]  ;;  %p3103_p9 = scmp.ne.s32.totalorder %s4921_s18, 0 }
  0xbe   : > { %v490_v27 = vld [vmem:[#allocation2 + $0x2c] sm:$0x1]  ;;  %483 = vst [vmem:[#allocation2 + $0x8] sm:$0x1] %v482_v24  ;;  %486 = vst [vmem:[#allocation2 + $0x14] sm:$0x1] %v485_v25 }
  0xbf   : > { %v488_v28 = vsel %vm4312_vm4, 0, %v487_v26  ;;  %v491_v29 = vsel %vm4312_vm4, 0, %v490_v27  ;;  %v493_v30 = vld [vmem:[#allocation2 + $0x38] sm:$0x1]  ;;  %v496_v31 = vld [vmem:[#allocation2 + $0x44] sm:$0x1] }
  0xc0   : > { %489 = vst [vmem:[#allocation2 + $0x20] sm:$0x1] %v488_v28  ;;  %492 = vst [vmem:[#allocation2 + $0x2c] sm:$0x1] %v491_v29  ;;  %v494_v32 = vsel %vm4312_vm4, 0, %v493_v30  ;;  %v497_v33 = vsel %vm4312_vm4, 0, %v496_v31 }
  0xc1   : > { %v499_v34 = vld [vmem:[#allocation2 + $0x50] sm:$0x1]  ;;  %v502_v35 = vld [vmem:[#allocation2 + $0x5c] sm:$0x1]  ;;  %495 = vst [vmem:[#allocation2 + $0x38] sm:$0x1] %v494_v32 }
  0xc2   : > { %498 = vst [vmem:[#allocation2 + $0x44] sm:$0x1] %v497_v33  ;;  %v500_v36 = vsel %vm4312_vm4, 0, %v499_v34  ;;  %v503_v37 = vsel %vm4312_vm4, 0, %v502_v35  ;;  %v505_v38 = vld [vmem:[#allocation2 + $0x68] sm:$0x1] }
  0xc3   : > { %v508_v39 = vld [vmem:[#allocation2 + $0x74] sm:$0x1]  ;;  %501 = vst [vmem:[#allocation2 + $0x50] sm:$0x1] %v500_v36  ;;  %504 = vst [vmem:[#allocation2 + $0x5c] sm:$0x1] %v503_v37 }
  0xc4   : > { %v506_v40 = vsel %vm4312_vm4, 0, %v505_v38  ;;  %v509_v41 = vsel %vm4312_vm4, 0, %v508_v39  ;;  %v511_v42 = vld [vmem:[%s4260_s0] sm:$0xf]  ;;  %vm527_vm6 = vsmask.f32 4368 }
  0xc5   : > { %507 = vst [vmem:[#allocation2 + $0x68] sm:$0x1] %v506_v40  ;;  %510 = vst [vmem:[#allocation2 + $0x74] sm:$0x1] %v509_v41  ;;  %v530_v43 = vshrl.u32 %v511_v42, 16  ;;  %v533_v44 = vshll.u32 %v511_v42, 16 }
  0xc6   : > { %v512_v45 = vld [vmem:[%s4260_s0 + $0x4] sm:$0xf]  ;;  %v513_v46 = vld [vmem:[%s4260_s0 + $0x8] sm:$0xf]  ;;  %v692_v47 = vld [vmem:[#allocation2 + $0xc] sm:$0xf] }
  0xc7   : > { %v538_v48 = vshrl.u32 %v512_v45, 16  ;;  %v541_v49 = vshll.u32 %v512_v45, 16  ;;  %v547_v50 = vshrl.u32 %v513_v46, 16  ;;  %v550_v51 = vshll.u32 %v513_v46, 16  ;;  %v514_v53 = vld [vmem:[%s4260_s0 + $0xc] sm:$0xf]  ;;  %vm4357_vm8 = vmor %vm447_vm1, %vm527_vm6 }
  0xc8   : > { %v532_v52 = vrot.slane %v530_v43, 7  ;;  %v515_v54 = vld [vmem:[%s4260_s0 + $0x10] sm:$0xf]  ;;  %v700_v58 = vld [vmem:[#allocation2 + $0x18] sm:$0xf]  ;;  %v555_v59 = vshrl.u32 %v514_v53, 16 }
  0xc9   : > { %v540_v56 = vrot.slane %v538_v48, 7  ;;  %v549_v57 = vrot.slane %v547_v50, 7  ;;  %v558_v60 = vshll.u32 %v514_v53, 16  ;;  %v697_v1 = vld [vmem:[#allocation2 + $0x14] sm:$0x1]  ;;  %v564_v2 = vshrl.u32 %v515_v54, 16 }
  0xca   : > { %v535_v61 = vor.u32 %v533_v44, %v532_v52  ;;  %v536_v63 = vrot.slane %v532_v52, 4  ;;  %v567_v3 = vshll.u32 %v515_v54, 16  ;;  %v516_v8 = vld [vmem:[%s4260_s0 + $0x14] sm:$0xf]  ;;  %v557_v10 = vrot.slane %v555_v59, 7 }
  0xcb   : > { %v543_v4 = vor.u32 %v541_v49, %v540_v56  ;;  %v545_v5 = vrot.slane %v540_v56, 4  ;;  %v552_v6 = vor.u32 %v550_v51, %v549_v57  ;;  %v553_v7 = vrot.slane %v549_v57, 4  ;;  %v704_v11 = vld [vmem:[#allocation2 + $0x20] sm:$0x1]  ;;  %v707_v17 = vld [vmem:[#allocation2 + $0x24] sm:$0xf] }
  0xcc   : > { %v693_v9 = vsel %vm4351_vm7, %v535_v61, %v692_v47  ;;  %v566_v12 = vrot.slane %v564_v2, 7  ;;  %v572_v13 = vshrl.u32 %v516_v8, 16  ;;  %v575_v18 = vshll.u32 %v516_v8, 16  ;;  %v517_v19 = vld [vmem:[%s4260_s0 + $0x18] sm:$0xf] }
  0xcd   : > { %694 = vst [vmem:[#allocation2 + $0xc] sm:$0xf] %v693_v9  ;;  %v544_v14 = vsel %vm4357_vm8, %v536_v63, %v543_v4  ;;  %v698_v15 = vsel %vm4289_vm2, %v545_v5, %v697_v1  ;;  %v701_v16 = vsel %vm4351_vm7, %v552_v6, %v700_v58  ;;  %v560_v20 = vor.u32 %v558_v60, %v557_v10  ;;  %v518_v24 = vld [vmem:[%s4260_s0 + $0x1c] sm:$0xf]  ;;  %v519_v29 = vld [vmem:[%s4260_s0 + $0x20] sm:$0xf] }
  0xce   : > { %696 = vst.msk [vmem:[#allocation2 + $0x10] sm:$0xf] %vm690_vm5, %v544_v14  ;;  %699 = vst [vmem:[#allocation2 + $0x14] sm:$0x1] %v698_v15  ;;  %v562_v21 = vrot.slane %v557_v10, 4  ;;  %v569_v22 = vor.u32 %v567_v3, %v566_v12  ;;  %v570_v23 = vrot.slane %v566_v12, 4 }
  0xcf   : > { %702 = vst [vmem:[#allocation2 + $0x18] sm:$0xf] %v701_v16  ;;  %v574_v25 = vrot.slane %v572_v13, 7  ;;  %v581_v26 = vshrl.u32 %v517_v19, 16  ;;  %v584_v27 = vshll.u32 %v517_v19, 16  ;;  %v589_v28 = vshrl.u32 %v518_v24, 16 }
  0xd0   : > { %v561_v30 = vsel %vm4357_vm8, %v553_v7, %v560_v20  ;;  %v705_v31 = vsel %vm4289_vm2, %v562_v21, %v704_v11  ;;  %v708_v32 = vsel %vm4351_vm7, %v569_v22, %v707_v17  ;;  %v711_v33 = vld [vmem:[#allocation2 + $0x2c] sm:$0x1]  ;;  %v592_v34 = vshll.u32 %v518_v24, 16  ;;  %v520_v35 = vld [vmem:[%s4260_s0 + $0x24] sm:$0xf] }
  0xd1   : > { %703 = vst.msk [vmem:[#allocation2 + $0x1c] sm:$0xf] %vm690_vm5, %v561_v30  ;;  %706 = vst [vmem:[#allocation2 + $0x20] sm:$0x1] %v705_v31  ;;  %v577_v36 = vor.u32 %v575_v18, %v574_v25  ;;  %v579_v37 = vrot.slane %v574_v25, 4  ;;  %v583_v38 = vrot.slane %v581_v26, 7 }
  0xd2   : > { %709 = vst [vmem:[#allocation2 + $0x24] sm:$0xf] %v708_v32  ;;  %v714_v39 = vld [vmem:[#allocation2 + $0x30] sm:$0xf]  ;;  %v591_v40 = vrot.slane %v589_v28, 7  ;;  %v598_v41 = vshrl.u32 %v519_v29, 16 }
  0xd3   : > { %v601_v42 = vshll.u32 %v519_v29, 16  ;;  %v606_v43 = vshrl.u32 %v520_v35, 16  ;;  %v609_v44 = vshll.u32 %v520_v35, 16  ;;  %v521_v45 = vld [vmem:[%s4260_s0 + $0x28] sm:$0xf]  ;;  %v578_v46 = vsel %vm4357_vm8, %v570_v23, %v577_v36 }
  0xd4   : > { %v712_v47 = vsel %vm4289_vm2, %v579_v37, %v711_v33  ;;  %v586_v48 = vor.u32 %v584_v27, %v583_v38  ;;  %v587_v49 = vrot.slane %v583_v38, 4  ;;  %v718_v50 = vld [vmem:[#allocation2 + $0x38] sm:$0x1]  ;;  %v522_v51 = vld [vmem:[%s4260_s0 + $0x2c] sm:$0xf]  ;;  %v594_v52 = vor.u32 %v592_v34, %v591_v40 }
  0xd5   : > { %710 = vst.msk [vmem:[#allocation2 + $0x28] sm:$0xf] %vm690_vm5, %v578_v46  ;;  %713 = vst [vmem:[#allocation2 + $0x2c] sm:$0x1] %v712_v47  ;;  %v596_v53 = vrot.slane %v591_v40, 4  ;;  %v600_v54 = vrot.slane %v598_v41, 7 }
  0xd6   : > { %v721_v56 = vld [vmem:[#allocation2 + $0x3c] sm:$0xf]  ;;  %v608_v57 = vrot.slane %v606_v43, 7  ;;  %v715_v58 = vsel %vm4351_vm7, %v586_v48, %v714_v39  ;;  %v615_v59 = vshrl.u32 %v521_v45, 16  ;;  %v618_v60 = vshll.u32 %v521_v45, 16 }
  0xd7   : > { %v623_v61 = vshrl.u32 %v522_v51, 16  ;;  %v523_v63 = vld [vmem:[%s4260_s0 + $0x30] sm:$0xf]  ;;  %716 = vst [vmem:[#allocation2 + $0x30] sm:$0xf] %v715_v58  ;;  %v595_v1 = vsel %vm4357_vm8, %v587_v49, %v594_v52  ;;  %v719_v2 = vsel %vm4289_vm2, %v596_v53, %v718_v50  ;;  %v603_v3 = vor.u32 %v601_v42, %v600_v54 }
  0xd8   : > { %v604_v4 = vrot.slane %v600_v54, 4  ;;  %v725_v5 = vld [vmem:[#allocation2 + $0x44] sm:$0x1]  ;;  %v728_v6 = vld [vmem:[#allocation2 + $0x48] sm:$0xf]  ;;  %v611_v7 = vor.u32 %v609_v44, %v608_v57  ;;  %v613_v8 = vrot.slane %v608_v57, 4 }
  0xd9   : > { %717 = vst.msk [vmem:[#allocation2 + $0x34] sm:$0xf] %vm690_vm5, %v595_v1  ;;  %720 = vst [vmem:[#allocation2 + $0x38] sm:$0x1] %v719_v2  ;;  %v617_v9 = vrot.slane %v615_v59, 7  ;;  %v625_v10 = vrot.slane %v623_v61, 7  ;;  %v722_v12 = vsel %vm4351_vm7, %v603_v3, %v721_v56 }
  0xda   : > { %v524_v11 = vld [vmem:[%s4260_s0 + $0x34] sm:$0xf]  ;;  %v626_v13 = vshll.u32 %v522_v51, 16  ;;  %v632_v14 = vshrl.u32 %v523_v63, 16  ;;  %v635_v15 = vshll.u32 %v523_v63, 16  ;;  %v612_v17 = vsel %vm4357_vm8, %v604_v4, %v611_v7 }
  0xdb   : > { %v525_v16 = vld [vmem:[%s4260_s0 + $0x38] sm:$0xf]  ;;  %723 = vst [vmem:[#allocation2 + $0x3c] sm:$0xf] %v722_v12  ;;  %v726_v18 = vsel %vm4289_vm2, %v613_v8, %v725_v5  ;;  %v620_v19 = vor.u32 %v618_v60, %v617_v9  ;;  %v621_v20 = vrot.slane %v617_v9, 4  ;;  %v630_v24 = vrot.slane %v625_v10, 4 }
  0xdc   : > { %v732_v21 = vld [vmem:[#allocation2 + $0x50] sm:$0x1]  ;;  %v735_v22 = vld [vmem:[#allocation2 + $0x54] sm:$0xf]  ;;  %724 = vst.msk [vmem:[#allocation2 + $0x40] sm:$0xf] %vm690_vm5, %v612_v17  ;;  %v628_v23 = vor.u32 %v626_v13, %v625_v10 }
  0xdd   : > { %727 = vst [vmem:[#allocation2 + $0x44] sm:$0x1] %v726_v18  ;;  %v634_v25 = vrot.slane %v632_v14, 7  ;;  %v640_v26 = vshrl.u32 %v524_v11, 16  ;;  %v526_v27 = vld [vmem:[%s4260_s0 + $0x3c] sm:$0xf]  ;;  %v729_v28 = vsel %vm4351_vm7, %v620_v19, %v728_v6  ;;  %v733_v34 = vsel %vm4289_vm2, %v630_v24, %v732_v21 }
  0xde   : > { %v643_v29 = vshll.u32 %v524_v11, 16  ;;  %v649_v30 = vshrl.u32 %v525_v16, 16  ;;  %v652_v31 = vshll.u32 %v525_v16, 16  ;;  %v749_v32 = vld [vmem:[%s372_s24] sm:$0xf]  ;;  %v629_v33 = vsel %vm4357_vm8, %v621_v20, %v628_v23 }
  0xdf   : > { %730 = vst [vmem:[#allocation2 + $0x48] sm:$0xf] %v729_v28  ;;  %v637_v35 = vor.u32 %v635_v15, %v634_v25  ;;  %v638_v36 = vrot.slane %v634_v25, 4  ;;  %v739_v37 = vld [vmem:[#allocation2 + $0x5c] sm:$0x1]  ;;  %v642_v39 = vrot.slane %v640_v26, 7 }
  0xe0   : > { %v750_v38 = vld [vmem:[%s372_s24 + $0x4] sm:$0xf]  ;;  %731 = vst.msk [vmem:[#allocation2 + $0x4c] sm:$0xf] %vm690_vm5, %v629_v33  ;;  %734 = vst [vmem:[#allocation2 + $0x50] sm:$0x1] %v733_v34 }
  0xe1   : > { %v651_v40 = vrot.slane %v649_v30, 7  ;;  %v742_v41 = vld [vmem:[#allocation2 + $0x60] sm:$0xf]  ;;  %v657_v42 = vshrl.u32 %v526_v27, 16  ;;  %v660_v43 = vshll.u32 %v526_v27, 16  ;;  %v736_v44 = vsel %vm4351_vm7, %v637_v35, %v735_v22 }
  0xe2   : > { %v752_v45 = vshrl.u32 %v749_v32, 16  ;;  %v755_v46 = vshll.u32 %v749_v32, 16  ;;  %v760_v47 = vshrl.u32 %v750_v38, 16  ;;  %v778_v48 = vld [vmem:[%s381_s13] sm:$0xf]  ;;  %v645_v49 = vor.u32 %v643_v29, %v642_v39 }
  0xe3   : > { %737 = vst [vmem:[#allocation2 + $0x54] sm:$0xf] %v736_v44  ;;  %v647_v50 = vrot.slane %v642_v39, 4  ;;  %v654_v51 = vor.u32 %v652_v31, %v651_v40  ;;  %v655_v52 = vrot.slane %v651_v40, 4  ;;  %v659_v53 = vrot.slane %v657_v42, 7 }
  0xe4   : > { %v746_v54 = vld [vmem:[#allocation2 + $0x68] sm:$0x1]  ;;  %v754_v56 = vrot.slane %v752_v45, 7  ;;  %v762_v57 = vrot.slane %v760_v47, 7  ;;  %v763_v58 = vshll.u32 %v750_v38, 16  ;;  %v646_v59 = vsel %vm4357_vm8, %v638_v36, %v645_v49 }
  0xe5   : > { %v740_v60 = vsel %vm4289_vm2, %v647_v50, %v739_v37  ;;  %v743_v61 = vsel %vm4351_vm7, %v654_v51, %v742_v41  ;;  %v771_v63 = vld [vmem:[#allocation2] sm:$0xf]  ;;  %v781_v1 = vshrl.u32 %v778_v48, 16  ;;  %v779_v2 = vld [vmem:[%s381_s13 + $0x4] sm:$0xf]  ;;  %v662_v3 = vor.u32 %v660_v43, %v659_v53 }
  0xe6   : > { %738 = vst.msk [vmem:[#allocation2 + $0x58] sm:$0xf] %vm690_vm5, %v646_v59  ;;  %741 = vst [vmem:[#allocation2 + $0x5c] sm:$0x1] %v740_v60  ;;  %v664_v4 = vrot.slane %v659_v53, 4  ;;  %v757_v5 = vor.u32 %v755_v46, %v754_v56  ;;  %v758_v6 = vrot.slane %v754_v56, 4  ;;  %v765_v8 = vor.u32 %v763_v58, %v762_v57 }
  0xe7   : > { %744 = vst [vmem:[#allocation2 + $0x60] sm:$0xf] %v743_v61  ;;  %v775_v7 = vld [vmem:[#allocation2 + $0x8] sm:$0x1]  ;;  %v767_v9 = vrot.slane %v762_v57, 4  ;;  %v783_v10 = vrot.slane %v781_v1, 7  ;;  %v663_v12 = vsel %vm4357_vm8, %v655_v52, %v662_v3 }
  0xe8   : > { %v784_v11 = vshll.u32 %v778_v48, 16  ;;  %v747_v13 = vsel %vm4289_vm2, %v664_v4, %v746_v54  ;;  %v772_v14 = vsel %vm4351_vm7, %v757_v5, %v771_v63  ;;  %v801_v15 = vld [vmem:[#allocation2 + $0x6c] sm:$0xf]  ;;  %v789_v16 = vshrl.u32 %v779_v2, 16  ;;  %745 = vst.msk [vmem:[#allocation2 + $0x64] sm:$0xf] %vm690_vm5, %v663_v12 }
  0xe9   : > { %748 = vst [vmem:[#allocation2 + $0x68] sm:$0x1] %v747_v13  ;;  %773 = vst [vmem:[#allocation2] sm:$0xf] %v772_v14  ;;  %v766_v17 = vsel %vm4357_vm8, %v758_v6, %v765_v8  ;;  %v776_v18 = vsel %vm4289_vm2, %v767_v9, %v775_v7  ;;  %v787_v20 = vrot.slane %v783_v10, 4  ;;  %v792_v22 = vshll.u32 %v779_v2, 16 }
  0xea   : > { %v786_v19 = vor.u32 %v784_v11, %v783_v10  ;;  %774 = vst.msk [vmem:[#allocation2 + $0x4] sm:$0xf] %vm690_vm5, %v766_v17  ;;  %777 = vst [vmem:[#allocation2 + $0x8] sm:$0x1] %v776_v18  ;;  %v791_v21 = vrot.slane %v789_v16, 7  ;;  %811 = sbr.rel (%p3103_p9) target bundleno = 244 (0xf4), region = 64 }
  0xeb   : > { %v805_v24 = vld [vmem:[#allocation2 + $0x74] sm:$0x1]  ;;  %v3894_v32 = vmov (!%p3103_p9), 0  }
  0xec   : > { %v802_v23 = vsel %vm4351_vm7, %v786_v19, %v801_v15  ;;  %v794_v25 = vor.u32 %v792_v22, %v791_v21  ;;  %v796_v26 = vrot.slane %v791_v21, 4  ;;  %815 = vst.msk [vmem:[#allocation2 + $0x4] sm:$0xf] (!%p3103_p9), %vm690_vm5, %v3894_v32 }
  0xed   : > { %803 = vst [vmem:[#allocation2 + $0x6c] sm:$0xf] %v802_v23 }
  0xee   : > { %v795_v27 = vsel %vm4357_vm8, %v787_v20, %v794_v25  ;;  %v806_v28 = vsel %vm4289_vm2, %v796_v26, %v805_v24 }
  0xef   : > { %804 = vst.msk [vmem:[#allocation2 + $0x70] sm:$0xf] %vm690_vm5, %v795_v27  ;;  %807 = vst [vmem:[#allocation2 + $0x74] sm:$0x1] %v806_v28 }
  0xf0   : > { %v812_v29 = vld [vmem:[#allocation2] sm:$0xf] (!%p3103_p9) }
  0xf1   : > { %v816_v30 = vld [vmem:[#allocation2 + $0x8] sm:$0x1]  ;;  %v813_v31 = vsel %vm4351_vm7, 0, %v812_v29 }
  0xf2   : > { %v817_v62 = vsel %vm4289_vm2, 0, %v816_v30  ;;  %814 = vst [vmem:[#allocation2] sm:$0xf] %v813_v31 }
  0xf3   : > { %818 = vst [vmem:[#allocation2 + $0x8] sm:$0x1] %v817_v62 }
  0xf4 PF: > { %s4932_s0 = sld [smem:[#allocation14_spill]] }
  0xfa   : > { %p3104_p7 = scmp.ne.s32.totalorder %s4932_s0, 1 }
  0xfb   : > { %v823_v33 = vld [vmem:[#allocation2 + $0x6c] sm:$0xf] (!%p3104_p7)  ;;  %v827_v34 = vld [vmem:[#allocation2 + $0x74] sm:$0x1] (!%p3104_p7)  ;;  %v3895_v36 = vmov (!%p3104_p7), 0  }
  0xfc   : > { %822 = sbr.rel (%p3104_p7) target bundleno = 259 (0x103), region = 68  ;;  %v824_v35 = vsel (!%p3104_p7), %vm4351_vm7, 0, %v823_v33  ;;  %826 = vst.msk [vmem:[#allocation2 + $0x70] sm:$0xf] (!%p3104_p7), %vm690_vm5, %v3895_v36  ;;  %v828_v37 = vsel (!%p3104_p7), %vm4289_vm2, 0, %v827_v34 }
  0xfd   : > { %825 = vst [vmem:[#allocation2 + $0x6c] sm:$0xf] (!%p3104_p7), %v824_v35  ;;  %829 = vst [vmem:[#allocation2 + $0x74] sm:$0x1] (!%p3104_p7), %v828_v37 }
 0x103 PF: > { %v3545_v38 = vld [vmem:[#allocation2] sm:$0xff]   ;;  %v3546_v39 = vld [vmem:[#allocation2 + $0x8] ss:$0 sps:$4 sm:$0x11]   ;;  %vm991_vm9 = vsmask.f32 7424 }
 0x104   : > { %vm1209_vm10 = vcmask 1046528   ;;  %v993_v40 = vshrl.u32 %v3545_v38, 16  ;;  %v995_v41 = vshll.u32 %v3545_v38, 16  ;;  %v1000_v42 = vshll.u32 %v3546_v39, 16  ;;  %v3547_v43 = vld [vmem:[#allocation2] sm:$0xfe]  }
 0x105   : > { %v3548_v44 = vld [vmem:[#allocation2 + $0x8] ss:$0 sps:$4 sm:$0x11]   ;;  %v3549_v55 = vld [vmem:[#allocation2 + $0xc] sm:$0xff]   ;;  %v1210_v47 = vrot.slane %v3547_v43, 1  ;;  %v3553_v52 = vld [vmem:[#allocation2 + $0x18] sm:$0xff]  }
 0x106   : > { %v997_v45 = vrot.slane %v995_v41, 1  ;;  %v1002_v46 = vrot.slane %v1000_v42, 1  ;;  %v1211_v48 = vrot.slane %v3548_v44, 1  ;;  %v1005_v49 = vshrl.u32 %v3549_v55, 16  ;;  %v3555_v56 = vld [vmem:[#allocation2 + $0x24] sm:$0xff]   ;;  %s3896_s17 = smov 32  }
 0x107   : > { %v1007_v0 = vshll.u32 %v3549_v55, 16  ;;  %v3550_v51 = vld [vmem:[#allocation2 + $0x14] ss:$0 sps:$4 sm:$0x11]   ;;  %v3551_v59 = vld [vmem:[#allocation2 + $0xc] sm:$0xfe]  }
 0x108   : > { %v998_v50 = vor.u32 %v997_v45, %v993_v40  ;;  %v1212_v53 = vsel %vm1209_vm10, %v1210_v47, %v1211_v48  ;;  %v1012_v58 = vshll.u32 %v3550_v51, 16  ;;  %v3552_v60 = vld [vmem:[#allocation2 + $0x14] ss:$0 sps:$4 sm:$0x11]   ;;  %s3897_s1 = smov 16   ;;  %v1213_v1 = vrot.slane %v3551_v59, 1 }
 0x109   : > { %v1009_v54 = vrot.slane %v1007_v0, 1  ;;  %1234 = vrot.lane.b32.xlu1 %v1212_v53, %s3896_s17  ;;  %v1214_v2 = vrot.slane %v3552_v60, 1  ;;  %v3554_v3 = vld [vmem:[#allocation2 + $0x20] ss:$0 sps:$4 sm:$0x11]   ;;  %v1017_v4 = vshrl.u32 %v3553_v52, 16 }
 0x10a   : > { %v1003_v57 = vsel %vm991_vm9, %v998_v50, %v1002_v46  ;;  %v1014_v63 = vrot.slane %v1012_v58, 1  ;;  %v1019_v5 = vshll.u32 %v3553_v52, 16  ;;  %v1024_v8 = vshll.u32 %v3554_v3, 16  ;;  %v3556_v9 = vld [vmem:[#allocation2 + $0x2c] ss:$0 sps:$4 sm:$0x11]  }
 0x10b   : > { %1088 = vrot.lane.b32.xlu0 %v1003_v57, %s3897_s1  ;;  %v1010_v61 = vor.u32 %v1009_v54, %v1005_v49  ;;  %v1215_v7 = vsel %vm1209_vm10, %v1213_v1, %v1214_v2  ;;  %v1029_v11 = vshrl.u32 %v3555_v56, 16  ;;  %v1031_v12 = vshll.u32 %v3555_v56, 16  ;;  %v3561_v13 = vld [vmem:[#allocation2 + $0x30] sm:$0xff]   ;;  %v3557_v18 = vld [vmem:[#allocation2 + $0x18] sm:$0xfe]   ;;  %v3575_v3 = vld [vmem:[#allocation2 + $0x48] sm:$0xff]  }
 0x10c   : > { %v1021_v10 = vrot.slane %v1019_v5, 1  ;;  %v1026_v14 = vrot.slane %v1024_v8, 1  ;;  %v1036_v15 = vshll.u32 %v3556_v9, 16  ;;  %v3558_v19 = vld [vmem:[#allocation2 + $0x20] ss:$0 sps:$4 sm:$0x11]  }
 0x10d   : > { %v1015_v6 = vsel %vm991_vm9, %v1010_v61, %v1014_v63  ;;  %1236 = vrot.lane.b32.xlu1 %v1215_v7, %s3896_s17  ;;  %v1033_v17 = vrot.slane %v1031_v12, 1  ;;  %v1041_v21 = vshrl.u32 %v3561_v13, 16  ;;  %v1216_v24 = vrot.slane %v3557_v18, 1  ;;  %v3559_v26 = vld [vmem:[#allocation2 + $0x24] sm:$0xfe]   ;;  %v3563_v32 = vld [vmem:[#allocation2 + $0x3c] sm:$0xff]  }
 0x10e   : > { %v1022_v16 = vor.u32 %v1021_v10, %v1017_v4  ;;  %v1038_v20 = vrot.slane %v1036_v15, 1  ;;  %v1217_v25 = vrot.slane %v3558_v19, 1  ;;  %v3560_v27 = vld [vmem:[#allocation2 + $0x2c] ss:$0 sps:$4 sm:$0x11]   ;;  %v1043_v28 = vshll.u32 %v3561_v13, 16 }
 0x10f   : > { %1090 = vrot.lane.b32.xlu0 %v1015_v6, %s3897_s1  ;;  %v1034_v23 = vor.u32 %v1033_v17, %v1029_v11  ;;  %v1219_v31 = vrot.slane %v3559_v26, 1  ;;  %v1220_v62 = vrot.slane %v3560_v27, 1  ;;  %v3562_v33 = vld [vmem:[#allocation2 + $0x38] ss:$0 sps:$4 sm:$0x11]   ;;  %v3569_v35 = vld [vmem:[#allocation2 + $0xc] sm:$0xff]  }
 0x110   : > { %v1027_v22 = vsel %vm991_vm9, %v1022_v16, %v1026_v14  ;;  %v1218_v30 = vsel %vm1209_vm10, %v1216_v24, %v1217_v25  ;;  %v1045_v34 = vrot.slane %v1043_v28, 1  ;;  %v1048_v38 = vshll.u32 %v3562_v33, 16  ;;  %v3564_v39 = vld [vmem:[#allocation2 + $0x44] ss:$0 sps:$4 sm:$0x11]   ;;  %v3571_v0 = vld [vmem:[#allocation2 + $0x18] sm:$0xff]  }
 0x111   : > { %v1039_v29 = vsel %vm991_vm9, %v1034_v23, %v1038_v20  ;;  %v1221_v36 = vsel %vm1209_vm10, %v1219_v31, %v1220_v62  ;;  %v1053_v40 = vshrl.u32 %v3563_v32, 16  ;;  %v1055_v41 = vshll.u32 %v3563_v32, 16  ;;  %v3565_v55 = vld [vmem:[#allocation2 + $0x30] sm:$0xfe]   ;;  %v3567_v52 = vld [vmem:[#allocation2 + $0x3c] sm:$0xfe]  }
 0x112   : > { %1094 = vrot.lane.b32.xlu1 %v1039_v29, %s3897_s1  ;;  %v1046_v37 = vor.u32 %v1045_v34, %v1041_v21  ;;  %v1599_v42 = vshrl.u32 %v3569_v35, 16  ;;  %v1050_v43 = vrot.slane %v1048_v38, 1  ;;  %v1060_v44 = vshll.u32 %v3564_v39, 16  ;;  %v3566_v46 = vld [vmem:[#allocation2 + $0x38] ss:$0 sps:$4 sm:$0x11]  }
 0x113   : > { %1092 = vrot.lane.b32.xlu0 %v1027_v22, %s3897_s1  ;;  %v1057_v45 = vrot.slane %v1055_v41, 1  ;;  %v1222_v49 = vrot.slane %v3565_v55, 1  ;;  %v1223_v51 = vrot.slane %v3566_v46, 1  ;;  %v3568_v53 = vld [vmem:[#allocation2 + $0x44] ss:$0 sps:$4 sm:$0x11]  }
 0x114   : > { %v1051_v47 = vsel %vm991_vm9, %v1046_v37, %v1050_v43  ;;  %v1062_v48 = vrot.slane %v1060_v44, 1  ;;  %v1225_v57 = vrot.slane %v3567_v52, 1  ;;  %v1226_v58 = vrot.slane %v3568_v53, 1  ;;  %v3570_v59 = vld [vmem:[#allocation2 + $0x14] ss:$0 sps:$4 sm:$0x11]  }
 0x115   : > { %v1058_v50 = vor.u32 %v1057_v45, %v1053_v40  ;;  %v1224_v56 = vsel %vm1209_vm10, %v1222_v49, %v1223_v51  ;;  %v1601_v60 = vshll.u32 %v3569_v35, 16  ;;  %v1611_v61 = vshrl.u32 %v3571_v0, 16  ;;  %v3572_v2 = vld [vmem:[#allocation2 + $0x20] ss:$0 sps:$4 sm:$0x11]   ;;  %v3579_v19 = vld [vmem:[#allocation2 + $0x54] sm:$0xff]  }
 0x116   : > { %1240 = vrot.lane.b32.xlu1 %v1221_v36, %s3896_s17  ;;  %v1227_v63 = vsel %vm1209_vm10, %v1225_v57, %v1226_v58  ;;  %v1606_v1 = vshll.u32 %v3570_v59, 16  ;;  %v1613_v5 = vshll.u32 %v3571_v0, 16  ;;  %v1618_v7 = vshll.u32 %v3572_v2, 16  ;;  %v3573_v8 = vld [vmem:[#allocation2 + $0xc] sm:$0xfe]   ;;  %v3585_v21 = vld [vmem:[#allocation2 + $0x24] sm:$0xff]  }
 0x117   : > { %1238 = vrot.lane.b32.xlu0 %v1218_v30, %s3896_s17  ;;  %v1063_v54 = vsel %vm991_vm9, %v1058_v50, %v1062_v48  ;;  %v1603_v4 = vrot.slane %v1601_v60, 1  ;;  %v3574_v11 = vld [vmem:[#allocation2 + $0x14] ss:$0 sps:$4 sm:$0x11]   ;;  %v1814_v13 = vrot.slane %v3573_v8, 1  ;;  %v1065_v18 = vshrl.u32 %v3575_v3, 16 }
 0x118   : > { %v1608_v6 = vrot.slane %v1606_v1, 1  ;;  %v1615_v10 = vrot.slane %v1613_v5, 1  ;;  %v1620_v12 = vrot.slane %v1618_v7, 1  ;;  %v1815_v16 = vrot.slane %v3574_v11, 1  ;;  %v3577_v25 = vld [vmem:[#allocation2 + $0x18] sm:$0xfe]  }
 0x119   : > { %v1604_v9 = vor.u32 %v1603_v4, %v1599_v42  ;;  %v3576_v17 = vld [vmem:[#allocation2 + $0x50] ss:$0 sps:$4 sm:$0x11]   ;;  %v1067_v20 = vshll.u32 %v3575_v3, 16  ;;  %v1077_v26 = vshrl.u32 %v3579_v19, 16  ;;  %v1817_v30 = vrot.slane %v3577_v25, 1 }
 0x11a   : > { %1098 = vrot.lane.b32.xlu1 %v1063_v54, %s3897_s1  ;;  %v1616_v15 = vor.u32 %v1615_v10, %v1611_v61  ;;  %v1816_v23 = vsel %vm1209_vm10, %v1814_v13, %v1815_v16  ;;  %v1072_v24 = vshll.u32 %v3576_v17, 16  ;;  %v3578_v28 = vld [vmem:[#allocation2 + $0x20] ss:$0 sps:$4 sm:$0x11]   ;;  %v1079_v33 = vshll.u32 %v3579_v19, 16  ;;  %v3587_v52 = vld [vmem:[#allocation2 + $0x30] sm:$0xff]  }
 0x11b   : > { %1096 = vrot.lane.b32.xlu0 %v1051_v47, %s3897_s1  ;;  %v1609_v14 = vsel %vm991_vm9, %v1604_v9, %v1608_v6  ;;  %v1069_v27 = vrot.slane %v1067_v20, 1  ;;  %v1818_v32 = vrot.slane %v3578_v28, 1  ;;  %v3580_v62 = vld [vmem:[#allocation2 + $0x5c] ss:$0 sps:$4 sm:$0x11]   ;;  %v1623_v34 = vshrl.u32 %v3585_v21, 16 }
 0x11c   : > { %v1621_v22 = vsel %vm991_vm9, %v1616_v15, %v1620_v12  ;;  %v1074_v29 = vrot.slane %v1072_v24, 1  ;;  %v1081_v37 = vrot.slane %v1079_v33, 1  ;;  %v1084_v38 = vshll.u32 %v3580_v62, 16  ;;  %v3581_v39 = vld [vmem:[#allocation2 + $0x48] sm:$0xfe]   ;;  %v3593_v11 = vld [vmem:[#allocation2 + $0x18] sm:$0xff]  }
 0x11d   : > { %v1070_v31 = vor.u32 %v1069_v27, %v1065_v18  ;;  %v1819_v36 = vsel %vm1209_vm10, %v1817_v30, %v1818_v32  ;;  %v3582_v40 = vld [vmem:[#allocation2 + $0x50] ss:$0 sps:$4 sm:$0x11]   ;;  %v1625_v41 = vshll.u32 %v3585_v21, 16  ;;  %v1228_v44 = vrot.slane %v3581_v39, 1  ;;  %v3595_v20 = vld [vmem:[#allocation2 + $0x24] sm:$0xff]  }
 0x11e   : > { %1244 = vrot.lane.b32.xlu1 %v1227_v63, %s3896_s17  ;;  %v1082_v42 = vor.u32 %v1081_v37, %v1077_v26  ;;  %v1086_v43 = vrot.slane %v1084_v38, 1  ;;  %v3583_v55 = vld [vmem:[#allocation2 + $0x54] sm:$0xfe]   ;;  %v1229_v45 = vrot.slane %v3582_v40, 1  ;;  %v1635_v58 = vshrl.u32 %v3587_v52, 16  ;;  %v3603_v28 = vld [vmem:[#allocation2 + $0x48] sm:$0xff]  }
 0x11f   : > { %1242 = vrot.lane.b32.xlu0 %v1224_v56, %s3896_s17  ;;  %v1075_v35 = vsel %vm991_vm9, %v1070_v31, %v1074_v29  ;;  %v3584_v46 = vld [vmem:[#allocation2 + $0x5c] ss:$0 sps:$4 sm:$0x11]   ;;  %v1231_v48 = vrot.slane %v3583_v55, 1  ;;  %v1627_v49 = vrot.slane %v1625_v41, 1  ;;  %v1637_v59 = vshll.u32 %v3587_v52, 16 }
 0x120   : > { %v1087_v47 = vsel %vm991_vm9, %v1082_v42, %v1086_v43  ;;  %v1230_v0 = vsel %vm1209_vm10, %v1228_v44, %v1229_v45  ;;  %v1232_v50 = vrot.slane %v3584_v46, 1  ;;  %v3586_v51 = vld [vmem:[#allocation2 + $0x2c] ss:$0 sps:$4 sm:$0x11]   ;;  %v3589_v63 = vld [vmem:[#allocation2 + $0x24] sm:$0xfe]  }
 0x121   : > { %v1628_v54 = vor.u32 %v1627_v49, %v1623_v34  ;;  %v1630_v56 = vshll.u32 %v3586_v51, 16  ;;  %v3588_v57 = vld [vmem:[#allocation2 + $0x38] ss:$0 sps:$4 sm:$0x11]   ;;  %v1639_v1 = vrot.slane %v1637_v59, 1  ;;  %v1820_v5 = vrot.slane %v3589_v63, 1 }
 0x122   : > { %1696 = vrot.lane.b32.xlu1 %v1621_v22, %s3897_s1  ;;  %v1233_v53 = vsel %vm1209_vm10, %v1231_v48, %v1232_v50  ;;  %v1642_v61 = vshll.u32 %v3588_v57, 16  ;;  %v3590_v2 = vld [vmem:[#allocation2 + $0x2c] ss:$0 sps:$4 sm:$0x11]   ;;  %v3591_v6 = vld [vmem:[#allocation2 + $0x30] sm:$0xfe]  }
 0x123   : > { %1694 = vrot.lane.b32.xlu0 %v1609_v14, %s3897_s1  ;;  %v1632_v60 = vrot.slane %v1630_v56, 1  ;;  %v1640_v7 = vor.u32 %v1639_v1, %v1635_v58  ;;  %v1821_v8 = vrot.slane %v3590_v2, 1  ;;  %v3592_v9 = vld [vmem:[#allocation2 + $0x38] ss:$0 sps:$4 sm:$0x11]   ;;  %v1823_v10 = vrot.slane %v3591_v6, 1 }
 0x124   : > { %v1644_v4 = vrot.slane %v1642_v61, 1  ;;  %v1824_v14 = vrot.slane %v3592_v9, 1  ;;  %v3594_v15 = vld [vmem:[#allocation2 + $0x20] ss:$0 sps:$4 sm:$0x11]   ;;  %v2234_v16 = vshrl.u32 %v3593_v11, 16 }
 0x125   : > { %v1633_v3 = vsel %vm991_vm9, %v1628_v54, %v1632_v60  ;;  %v1822_v13 = vsel %vm1209_vm10, %v1820_v5, %v1821_v8  ;;  %v2236_v17 = vshll.u32 %v3593_v11, 16  ;;  %v2241_v19 = vshll.u32 %v3594_v15, 16  ;;  %v3596_v21 = vld [vmem:[#allocation2 + $0x2c] ss:$0 sps:$4 sm:$0x11]   ;;  %v3609_v52 = vld [vmem:[#allocation2 + $0x30] sm:$0xff]  }
 0x126   : > { %1100 = vrot.lane.b32.xlu1 %v1075_v35, %s3897_s1  ;;  %v1645_v12 = vsel %vm991_vm9, %v1640_v7, %v1644_v4  ;;  %v1825_v18 = vsel %vm1209_vm10, %v1823_v10, %v1824_v14  ;;  %v2246_v25 = vshrl.u32 %v3595_v20, 16  ;;  %v2248_v26 = vshll.u32 %v3595_v20, 16  ;;  %v3597_v30 = vld [vmem:[#allocation2 + $0x18] sm:$0xfe]   ;;  %v3599_v37 = vld [vmem:[#allocation2 + $0x24] sm:$0xfe]  }
 0x127   : > { %1838 = vrot.lane.b32.xlu0 %v1816_v23, %s3896_s17  ;;  %v2238_v22 = vrot.slane %v2236_v17, 1  ;;  %v3601_v23 = vld [vmem:[#allocation2 + $0x3c] sm:$0xff]   ;;  %v2243_v24 = vrot.slane %v2241_v19, 1  ;;  %v2253_v27 = vshll.u32 %v3596_v21, 16  ;;  %v2449_v35 = vrot.slane %v3597_v30, 1  ;;  %s4933_s7 = sld [smem:[#allocation26_spill]] }
 0x128   : > { %v3598_v31 = vld [vmem:[#allocation2 + $0x20] ss:$0 sps:$4 sm:$0x11]   ;;  %v1647_v32 = vshrl.u32 %v3601_v23, 16  ;;  %v2250_v62 = vrot.slane %v2248_v26, 1  ;;  %v1649_v40 = vshll.u32 %v3601_v23, 16 }
 0x129   : > { %v2239_v29 = vor.u32 %v2238_v22, %v2234_v16  ;;  %v2255_v33 = vrot.slane %v2253_v27, 1  ;;  %v3600_v39 = vld [vmem:[#allocation2 + $0x2c] ss:$0 sps:$4 sm:$0x11]   ;;  %v2452_v42 = vrot.slane %v3599_v37, 1  ;;  %v1659_v43 = vshrl.u32 %v3603_v28, 16 }
 0x12a   : > { %1102 = vrot.lane.b32.xlu1 %v1087_v47, %s3897_s1  ;;  %v2251_v38 = vor.u32 %v2250_v62, %v2246_v25  ;;  %v2453_v55 = vrot.slane %v3600_v39, 1  ;;  %v3602_v45 = vld [vmem:[#allocation2 + $0x44] ss:$0 sps:$4 sm:$0x11]   ;;  %v1651_v46 = vrot.slane %v1649_v40, 1  ;;  %v1661_v47 = vshll.u32 %v3603_v28, 16 }
 0x12b   : > { %1840 = vrot.lane.b32.xlu0 %v1819_v36, %s3896_s17  ;;  %v2244_v34 = vsel %vm991_vm9, %v2239_v29, %v2243_v24  ;;  %v2450_v36 = vrot.slane %v3598_v31, 1  ;;  %v3604_v50 = vld [vmem:[#allocation2 + $0x50] ss:$0 sps:$4 sm:$0x11]   ;;  %v3605_v57 = vld [vmem:[#allocation2 + $0x3c] sm:$0xfe]  }
 0x12c   : > { %v2256_v44 = vsel %vm991_vm9, %v2251_v38, %v2255_v33  ;;  %v2454_v48 = vsel %vm1209_vm10, %v2452_v42, %v2453_v55  ;;  %v1652_v49 = vor.u32 %v1651_v46, %v1647_v32  ;;  %v1663_v51 = vrot.slane %v1661_v47, 1  ;;  %v3606_v58 = vld [vmem:[#allocation2 + $0x44] ss:$0 sps:$4 sm:$0x11]   ;;  %v3607_v1 = vld [vmem:[#allocation2 + $0x48] sm:$0xfe]  }
 0x12d   : > { %v2451_v41 = vsel %vm1209_vm10, %v2449_v35, %v2450_v36  ;;  %v1666_v56 = vshll.u32 %v3604_v50, 16  ;;  %v2258_v59 = vshrl.u32 %v3609_v52, 16  ;;  %v1826_v63 = vrot.slane %v3605_v57, 1  ;;  %v3610_v9 = vld [vmem:[#allocation2 + $0x38] ss:$0 sps:$4 sm:$0x11]  }
 0x12e   : > { %1248 = vrot.lane.b32.xlu1 %v1233_v53, %s3896_s17  ;;  %v1664_v54 = vor.u32 %v1663_v51, %v1659_v43  ;;  %v1827_v2 = vrot.slane %v3606_v58, 1  ;;  %v1829_v5 = vrot.slane %v3607_v1, 1  ;;  %v2260_v6 = vshll.u32 %v3609_v52, 16  ;;  %v3611_v11 = vld [vmem:[#allocation2 + $0x3c] sm:$0xff]   ;;  %v3613_v20 = vld [vmem:[#allocation2 + $0x30] sm:$0xfe]  }
 0x12f   : > { %1246 = vrot.lane.b32.xlu0 %v1230_v0, %s3896_s17  ;;  %v1654_v0 = vshll.u32 %v3602_v45, 16  ;;  %v1668_v61 = vrot.slane %v1666_v56, 1  ;;  %v3612_v14 = vld [vmem:[#allocation2 + $0x44] ss:$0 sps:$4 sm:$0x11]   ;;  %v2270_v16 = vshrl.u32 %v3611_v11, 16 }
 0x130   : > { %v1828_v7 = vsel %vm1209_vm10, %v1826_v63, %v1827_v2  ;;  %v2262_v10 = vrot.slane %v2260_v6, 1  ;;  %v2272_v17 = vshll.u32 %v3611_v11, 16  ;;  %v2277_v19 = vshll.u32 %v3612_v14, 16  ;;  %v3614_v22 = vld [vmem:[#allocation2 + $0x38] ss:$0 sps:$4 sm:$0x11]  }
 0x131   : > { %v1656_v53 = vrot.slane %v1654_v0, 1  ;;  %v1669_v4 = vsel %vm991_vm9, %v1664_v54, %v1668_v61  ;;  %v2455_v25 = vrot.slane %v3613_v20, 1  ;;  %v3615_v26 = vld [vmem:[#allocation2 + $0x3c] sm:$0xfe]   ;;  %v2456_v28 = vrot.slane %v3614_v22, 1  ;;  %v3617_v31 = vld [vmem:[#allocation2 + $0x54] sm:$0xff]  }
 0x132   : > { %1700 = vrot.lane.b32.xlu1 %v1645_v12, %s3897_s1  ;;  %v2263_v15 = vor.u32 %v2262_v10, %v2258_v59  ;;  %v2274_v21 = vrot.slane %v2272_v17, 1  ;;  %v2279_v24 = vrot.slane %v2277_v19, 1  ;;  %v3616_v29 = vld [vmem:[#allocation2 + $0x44] ss:$0 sps:$4 sm:$0x11]   ;;  %v2458_v30 = vrot.slane %v3615_v26, 1 }
 0x133   : > { %1698 = vrot.lane.b32.xlu0 %v1633_v3, %s3897_s1  ;;  %v1657_v60 = vsel %vm991_vm9, %v1652_v49, %v1656_v53  ;;  %v3608_v3 = vld [vmem:[#allocation2 + $0x50] ss:$0 sps:$4 sm:$0x11]   ;;  %v2457_v62 = vsel %vm1209_vm10, %v2455_v25, %v2456_v28  ;;  %v2459_v33 = vrot.slane %v3616_v29, 1  ;;  %v1671_v35 = vshrl.u32 %v3617_v31, 16  ;;  %v3619_v39 = vld [vmem:[#allocation2 + $0x60] sm:$0xff]  }
 0x134   : > { %v1830_v8 = vrot.slane %v3608_v3, 1  ;;  %v2275_v27 = vor.u32 %v2274_v21, %v2270_v16  ;;  %v1673_v36 = vshll.u32 %v3617_v31, 16  ;;  %v3620_v40 = vld [vmem:[#allocation2 + $0x68] ss:$0 sps:$4 sm:$0x11]   ;;  %v1685_v55 = vshll.u32 %v3619_v39, 16 }
 0x135   : > { %v2460_v37 = vsel %vm1209_vm10, %v2458_v30, %v2459_v33  ;;  %v3625_v42 = vld [vmem:[#allocation2 + $0x48] sm:$0xff]   ;;  %v1690_v45 = vshll.u32 %v3620_v40, 16  ;;  %v3627_v46 = vld [vmem:[#allocation2 + $0x54] sm:$0xff]   ;;  %v3622_v49 = vld [vmem:[#allocation2 + $0x5c] ss:$0 sps:$4 sm:$0x11]  }
 0x136   : > { %1844 = vrot.lane.b32.xlu1 %v1825_v18, %s3896_s17  ;;  %v1831_v12 = vsel %vm1209_vm10, %v1829_v5, %v1830_v8  ;;  %v2280_v32 = vsel %vm991_vm9, %v2275_v27, %v2279_v24  ;;  %v2282_v0 = vshrl.u32 %v3625_v42, 16  ;;  %v1687_v50 = vrot.slane %v1685_v55, 1  ;;  %v3623_v56 = vld [vmem:[#allocation2 + $0x60] sm:$0xfe]   ;;  %v3631_v21 = vld [vmem:[#allocation2 + $0x54] sm:$0xfe]  }
 0x137   : > { %1842 = vrot.lane.b32.xlu0 %v1822_v13, %s3896_s17  ;;  %v2265_v13 = vshll.u32 %v3610_v9, 16  ;;  %v1692_v51 = vrot.slane %v1690_v45, 1  ;;  %v1833_v54 = vrot.slane %v3622_v49, 1  ;;  %v3624_v58 = vld [vmem:[#allocation2 + $0x68] ss:$0 sps:$4 sm:$0x11]  }
 0x138   : > { %v2284_v59 = vshll.u32 %v3625_v42, 16  ;;  %v1835_v61 = vrot.slane %v3623_v56, 1  ;;  %v2294_v63 = vshrl.u32 %v3627_v46, 16  ;;  %v1836_v2 = vrot.slane %v3624_v58, 1  ;;  %v3633_v11 = vld [vmem:[#allocation2 + $0x60] sm:$0xff]   ;;  %v3635_v31 = vld [vmem:[#allocation2 + $0x6c] sm:$0xff]  }
 0x139   : > { %v2267_v18 = vrot.slane %v2265_v13, 1  ;;  %v3626_v3 = vld [vmem:[#allocation2 + $0x50] ss:$0 sps:$4 sm:$0x11]   ;;  %v2296_v5 = vshll.u32 %v3627_v46, 16  ;;  %v2306_v17 = vshrl.u32 %v3633_v11, 16 }
 0x13a   : > { %2331 = vrot.lane.b32.xlu1 %v2256_v44, %s3897_s1  ;;  %v1683_v44 = vshrl.u32 %v3619_v39, 16  ;;  %v1837_v6 = vsel %vm1209_vm10, %v1835_v61, %v1836_v2  ;;  %v2289_v8 = vshll.u32 %v3626_v3, 16  ;;  %v3628_v9 = vld [vmem:[#allocation2 + $0x5c] ss:$0 sps:$4 sm:$0x11]   ;;  %v2464_v25 = vrot.slane %v3631_v21, 1 }
 0x13b   : > { %2329 = vrot.lane.b32.xlu0 %v2244_v34, %s3897_s1  ;;  %v2268_v23 = vsel %vm991_vm9, %v2263_v15, %v2267_v18  ;;  %v3618_v34 = vld [vmem:[#allocation2 + $0x5c] ss:$0 sps:$4 sm:$0x11]   ;;  %v2298_v10 = vrot.slane %v2296_v5, 1  ;;  %v2301_v14 = vshll.u32 %v3628_v9, 16  ;;  %v2308_v26 = vshll.u32 %v3633_v11, 16 }
 0x13c   : > { %v1678_v38 = vshll.u32 %v3618_v34, 16  ;;  %v1688_v57 = vor.u32 %v1687_v50, %v1683_v44  ;;  %v3629_v15 = vld [vmem:[#allocation2 + $0x48] sm:$0xfe]   ;;  %v3630_v16 = vld [vmem:[#allocation2 + $0x50] ss:$0 sps:$4 sm:$0x11]  }
 0x13d   : > { %v2299_v13 = vor.u32 %v2298_v10, %v2294_v63  ;;  %v2303_v19 = vrot.slane %v2301_v14, 1  ;;  %v2461_v20 = vrot.slane %v3629_v15, 1  ;;  %v2462_v22 = vrot.slane %v3630_v16, 1  ;;  %v3634_v29 = vld [vmem:[#allocation2 + $0x68] ss:$0 sps:$4 sm:$0x11]  }
 0x13e   : > { %2475 = vrot.lane.b32.xlu1 %v2454_v48, %s3896_s17  ;;  %v1680_v43 = vrot.slane %v1678_v38, 1  ;;  %v3621_v48 = vld [vmem:[#allocation2 + $0x54] sm:$0xfe]   ;;  %v1693_v1 = vsel %vm991_vm9, %v1688_v57, %v1692_v51  ;;  %v2310_v30 = vrot.slane %v2308_v26, 1  ;;  %v3637_v39 = vld [vmem:[#allocation2 + $0x60] sm:$0xfe]  }
 0x13f   : > { %2473 = vrot.lane.b32.xlu0 %v2451_v41, %s3896_s17  ;;  %v1675_v41 = vrot.slane %v1673_v36, 1  ;;  %v1832_v53 = vrot.slane %v3621_v48, 1  ;;  %v2304_v24 = vsel %vm991_vm9, %v2299_v13, %v2303_v19  ;;  %v2463_v27 = vsel %vm1209_vm10, %v2461_v20, %v2462_v22  ;;  %v3636_v33 = vld [vmem:[#allocation2 + $0x74] ss:$0 sps:$4 sm:$0x11]   ;;  %v3641_v49 = vld [vmem:[#allocation2] sm:$0xff]  }
 0x140   : > { %v2311_v34 = vor.u32 %v2310_v30, %v2306_v17  ;;  %v2320_v36 = vshll.u32 %v3635_v31, 16  ;;  %v2325_v38 = vshll.u32 %v3636_v33, 16  ;;  %v2467_v44 = vrot.slane %v3637_v39, 1  ;;  %v3639_v55 = vld [vmem:[#allocation2 + $0x6c] sm:$0xfe]   ;;  %v3645_v57 = vld [vmem:[#allocation2 + $0x18] sm:$0xff]  }
 0x141   : > { %v1676_v47 = vor.u32 %v1675_v41, %v1671_v35  ;;  %v2318_v35 = vshrl.u32 %v3635_v31, 16  ;;  %v3638_v41 = vld [vmem:[#allocation2 + $0x68] ss:$0 sps:$4 sm:$0x11]   ;;  %v2470_v48 = vrot.slane %v3639_v55, 1  ;;  %vm894_vm11 = vcmask 130048  }
 0x142   : > { %1704 = vrot.lane.b32.xlu1 %v1669_v4, %s3897_s1  ;;  %v2286_v4 = vrot.slane %v2284_v59, 1  ;;  %v2322_v40 = vrot.slane %v2320_v36, 1  ;;  %v2468_v46 = vrot.slane %v3638_v41, 1  ;;  %895 = vst.msk [vmem:[#allocation3] sm:$0xff] %vm894_vm11, %v3641_v49  ;;  %v3644_v56 = vld [vmem:[%s4933_s7 + $0x8] sm:$0xff]   ;;  %897 = vst.msk [vmem:[#allocation3 + $0x10] sm:$0xff] %vm894_vm11, %v3645_v57 }
 0x143   : > { %1702 = vrot.lane.b32.xlu0 %v1657_v60, %s3897_s1  ;;  %v1681_v52 = vsel %vm991_vm9, %v1676_v47, %v1680_v43  ;;  %v1834_v60 = vsel %vm1209_vm10, %v1832_v53, %v1833_v54  ;;  %v2327_v43 = vrot.slane %v2325_v38, 1  ;;  %v3640_v47 = vld [vmem:[#allocation2 + $0x74] ss:$0 sps:$4 sm:$0x11]   ;;  %v3643_v53 = vld [vmem:[#allocation2 + $0xc] sm:$0xff]   ;;  %v3646_v58 = vld [vmem:[#allocation2 + $0x24] sm:$0xff]  }
 0x144   : > { %v2323_v45 = vor.u32 %v2322_v40, %v2318_v35  ;;  %v2469_v50 = vsel %vm1209_vm10, %v2467_v44, %v2468_v46  ;;  %v2471_v51 = vrot.slane %v3640_v47, 1  ;;  %896 = vst.msk [vmem:[#allocation3 + $0x8] sm:$0xff] %vm894_vm11, %v3643_v53  ;;  %v3647_v59 = vld [vmem:[%s4933_s7 + $0x10] sm:$0xff]   ;;  %898 = vst.msk [vmem:[#allocation3 + $0x18] sm:$0xff] %vm894_vm11, %v3646_v58  ;;  %v3649_v61 = vld [vmem:[#allocation2 + $0x3c] sm:$0xff]   ;;  %vm1112_vm12 = vcmask 261248  }
 0x145   : > { %v3650_v63 = vld [vmem:[#allocation2 + $0xc] sm:$0xff]   ;;  %vm1258_vm13 = vcmask 392448   ;;  %900 = vst.msk [vmem:[#allocation3 + $0x28] sm:$0xff] %vm894_vm11, %v3649_v61  ;;  %v3651_v2 = vld [vmem:[#allocation2 + $0x18] sm:$0xff]   ;;  %v3657_v11 = vld [vmem:[#allocation2 + $0x24] sm:$0xff]   ;;  %vm1299_vm14 = vcmask 392192  }
 0x146   : > { %1848 = vrot.lane.b32.xlu1 %v1831_v12, %s3896_s17  ;;  %v2291_v12 = vrot.slane %v2289_v8, 1  ;;  %v2472_v54 = vsel %vm1209_vm10, %v2470_v48, %v2471_v51  ;;  %1502 = vst.msk [vmem:[#allocation3 + $0x40] sm:$0xff] %vm894_vm11, %v3650_v63  ;;  %1503 = vst.msk [vmem:[#allocation3 + $0x48] sm:$0xff] %vm894_vm11, %v3651_v2  ;;  %v3653_v5 = vld [vmem:[#allocation2 + $0x48] sm:$0xff]   ;;  %v3659_v13 = vld [vmem:[%s4933_s7 + $0x30] sm:$0xff]   ;;  %s4934_s12 = sld [smem:[#allocation28_spill]] }
 0x147   : > { %1846 = vrot.lane.b32.xlu0 %v1828_v7, %s3896_s17  ;;  %v2287_v7 = vor.u32 %v2286_v4, %v2282_v0  ;;  %v2328_v0 = vsel %vm991_vm9, %v2323_v45, %v2327_v43  ;;  %v3652_v4 = vld [vmem:[%s4933_s7 + $0x18] sm:$0xff]   ;;  %901 = vst.msk [vmem:[#allocation3 + $0x30] sm:$0xff] %vm894_vm11, %v3653_v5  ;;  %v3656_v10 = vld [vmem:[%s4933_s7 + $0x28] sm:$0xff]   ;;  %1504 = vst.msk [vmem:[#allocation3 + $0x50] sm:$0xff] %vm894_vm11, %v3657_v11  ;;  %s4935_s22 = sld [smem:[#allocation27_spill]]  ;;  %s4936_s6 = sld [smem:[#allocation29_spill]] }
 0x148   : > { %3348 = vmatprep.subr.bf16.mxu1 %v3652_v4  ;;  %v3660_v14 = vld [vmem:[#allocation2 + $0x18] sm:$0xff]   ;;  %v3661_v17 = vld [vmem:[#allocation2 + $0x24] sm:$0xff]   ;;  %v3666_v26 = vld [vmem:[#allocation2 + $0x30] sm:$0xff]   ;;  %vm2906_vm15 = vcmask 121856  }
 0x149   : > { %v2292_v18 = vsel %vm991_vm9, %v2287_v7, %v2291_v12  ;;  %3349 = vmatpush3.bf16.msra.mxu1 %v3652_v4  ;;  %v3655_v7 = vld [vmem:[#allocation2 + $0x54] sm:$0xff]   ;;  %v3663_v20 = vld [vmem:[#allocation2 + $0x3c] sm:$0xff]   ;;  %v3670_v35 = vld [vmem:[#allocation2 + $0x48] sm:$0xff]  }
 0x14a   : > { %2335 = vrot.lane.b32.xlu1 %v2280_v32, %s3897_s1  ;;  %902 = vst.msk [vmem:[#allocation3 + $0x38] sm:$0xff] %vm894_vm11, %v3655_v7  ;;  %v3658_v12 = vld [vmem:[#allocation2 + $0x30] sm:$0xff]   ;;  %v3662_v19 = vld [vmem:[%s4933_s7 + $0x38] sm:$0xff]   ;;  %1506 = vst.msk [vmem:[#allocation3 + $0x60] sm:$0xff] %vm894_vm11, %v3663_v20 }
 0x14b   : > { %2333 = vrot.lane.b32.xlu0 %v2268_v23, %s3897_s1  ;;  %v3632_v23 = vld [vmem:[#allocation2 + $0x5c] ss:$0 sps:$4 sm:$0x11]   ;;  %1505 = vst.msk [vmem:[#allocation3 + $0x58] sm:$0xff] %vm894_vm11, %v3658_v12  ;;  %v3671_v39 = vld [vmem:[#allocation2 + $0x54] sm:$0xff]   ;;  %v3672_v48 = vld [vmem:[#allocation2 + $0x60] sm:$0xff]  }
 0x14c   : > { %v2465_v28 = vrot.slane %v3632_v23, 1  ;;  %v3664_v23 = vld [vmem:[#allocation2 + $0x48] sm:$0xff]   ;;  %v3667_v30 = vld [vmem:[#allocation2 + $0x3c] sm:$0xff]  }
 0x14d   : > { %1507 = vst.msk [vmem:[#allocation3 + $0x68] sm:$0xff] %vm894_vm11, %v3664_v23 }
 0x14e   : > { %2479 = vrot.lane.b32.xlu1 %v2460_v37, %s3896_s17  ;;  %v2466_v32 = vsel %vm1209_vm10, %v2464_v25, %v2465_v28  ;;  %v3665_v25 = vld [vmem:[%s4933_s7 + $0x40] sm:$0xff]  }
 0x14f   : > { %2477 = vrot.lane.b32.xlu0 %v2457_v62, %s3896_s17  ;;  %v2313_v62 = vshll.u32 %v3634_v29, 16  ;;  %v3669_v29 = vld [vmem:[#allocation2 + $0x60] sm:$0xff]  }
 0x150   : > { %1509 = vst.msk [vmem:[#allocation3 + $0x78] sm:$0xff] %vm894_vm11, %v3669_v29 }
 0x151   : > { %v2315_v37 = vrot.slane %v2313_v62, 1 }
 0x152   : > { %1708 = vrot.lane.b32.xlu1 %v1693_v1, %s3897_s1 }
 0x153   : > { %1706 = vrot.lane.b32.xlu0 %v1681_v52, %s3897_s1  ;;  %v2316_v42 = vsel %vm991_vm9, %v2311_v34, %v2315_v37  ;;  %v3642_v52 = vld [vmem:[%s4933_s7] sm:$0xff]  }
 0x154   : > { %3326 = vmatprep.subr.bf16.mxu0 %v3642_v52 }
 0x155   : > { %3327 = vmatpush3.bf16.msra.mxu0 %v3642_v52 }
 0x156   : > { %1852 = vrot.lane.b32.xlu1 %v1837_v6, %s3896_s17  ;;  %3328 = vmatprep.subr.bf16.mxu0 %v3644_v56  ;;  %v3654_v6 = vld [vmem:[%s4933_s7 + $0x20] sm:$0xff]  }
 0x157   : > { %1850 = vrot.lane.b32.xlu0 %v1834_v60, %s3896_s17  ;;  %v3648_v60 = vld [vmem:[#allocation2 + $0x30] sm:$0xff]   ;;  %3350 = vmatprep.subr.bf16.mxu1 %v3654_v6 }
 0x158   : > { %899 = vst.msk [vmem:[#allocation3 + $0x20] sm:$0xff] %vm894_vm11, %v3648_v60  ;;  %3351 = vmatpush3.bf16.msra.mxu1 %v3654_v6 }
 0x159   : > { %3329 = vmatpush3.bf16.msra.mxu0 %v3644_v56  ;;  %3352 = vmatprep.subr.bf16.mxu1 %v3656_v10 }
 0x15a   : > { %2339 = vrot.lane.b32.xlu1 %v2304_v24, %s3897_s1  ;;  %3330 = vmatprep.subr.bf16.mxu0 %v3647_v59 }
 0x15b   : > { %2337 = vrot.lane.b32.xlu0 %v2292_v18, %s3897_s1 }
 0x15c   : > { %3353 = vmatpush3.bf16.msra.mxu1 %v3656_v10 }
 0x15d   : > { %3331 = vmatpush3.bf16.msra.mxu0 %v3647_v59 }
 0x15e   : > { %2483 = vrot.lane.b32.xlu1 %v2466_v32, %s3896_s17  ;;  %3370 = vmatprep.subr.bf16.mxu0 %v3659_v13 }
 0x15f   : > { %2481 = vrot.lane.b32.xlu0 %v2463_v27, %s3896_s17  ;;  %v3668_v27 = vld [vmem:[#allocation2 + $0x54] sm:$0xff]  }
 0x160   : > { %1508 = vst.msk [vmem:[#allocation3 + $0x70] sm:$0xff] %vm894_vm11, %v3668_v27 }
 0x162   : > { %2343 = vrot.lane.b32.xlu1 %v2328_v0, %s3897_s1 }
 0x163   : > { %2341 = vrot.lane.b32.xlu0 %v2316_v42, %s3897_s1 }
 0x166   : > { %2487 = vrot.lane.b32.xlu1 %v2472_v54, %s3896_s17 }
 0x167   : > { %2485 = vrot.lane.b32.xlu0 %v2469_v50, %s3896_s17  ;;  %v3673_v50 = vld [vmem:[#allocation2 + $0x6c] sm:$0xff]  }
 0x17b   : > { %v1235_v1 = vpop.permute.xlu1 %1234 }
 0x17d   : > { %v1089_v3 = vpop.permute.xlu0 %1088 }
 0x17e   : > { %1113 = vst.msk [vmem:[#allocation3] sm:$0xff] %vm1112_vm12, %v1089_v3 }
 0x17f   : > { %1259 = vst.msk [vmem:[#allocation3] sm:$0xff] %vm1258_vm13, %v1235_v1  ;;  %v1237_v9 = vpop.permute.xlu1 %1236 }
 0x181   : > { %v1091_v8 = vpop.permute.xlu0 %1090 }
 0x182   : > { %1114 = vst.msk [vmem:[#allocation3 + $0x8] sm:$0xff] %vm1112_vm12, %v1091_v8 }
 0x183   : > { %1260 = vst.msk [vmem:[#allocation3 + $0x8] sm:$0xff] %vm1258_vm13, %v1237_v9 }
 0x184   : > { %v1095_v18 = vpop.permute.xlu1 %1094 }
 0x185   : > { %v1093_v15 = vpop.permute.xlu0 %1092  ;;  %1116 = vst.msk [vmem:[#allocation3 + $0x18] sm:$0xff] %vm1112_vm12, %v1095_v18 }
 0x186   : > { %v1267_v16 = vld [vmem:[#allocation3] sm:$0xff]  ;;  %1115 = vst.msk [vmem:[#allocation3 + $0x10] sm:$0xff] %vm1112_vm12, %v1093_v15 }
 0x187   : > { %3332 = vmatprep.mubr.msk.bf16.mxu0 %vm1299_vm14, %v1267_v16  ;;  %2137 = vst.msk [vmem:[#allocation3] sm:$0xff] %vm894_vm11, %v3660_v14 }
 0x188   : > { %v1241_v24 = vpop.permute.xlu1 %1240 }
 0x189   : > { %v1239_v21 = vpop.permute.xlu0 %1238  ;;  %1262 = vst.msk [vmem:[#allocation3 + $0x18] sm:$0xff] %vm1258_vm13, %v1241_v24 }
 0x18a   : > { %v1268_v22 = vld [vmem:[#allocation3 + $0x8] sm:$0xff]  ;;  %1261 = vst.msk [vmem:[#allocation3 + $0x10] sm:$0xff] %vm1258_vm13, %v1239_v21 }
 0x18b   : > { %3333 = vmatmul.mubr.msk.bf16.vlgmr.msra.gmra.mrb[0].mxu0 %vm1299_vm14, %v1268_v22  ;;  %2138 = vst.msk [vmem:[#allocation3 + $0x8] sm:$0xff] %vm894_vm11, %v3661_v17 }
 0x18c   : > { %3371 = vmatpush3.bf16.msra.mxu0 %v3659_v13  ;;  %v1099_v31 = vpop.permute.xlu1 %1098 }
 0x18d   : > { %3372 = vmatprep.subr.bf16.mxu0 %v3662_v19  ;;  %v1097_v28 = vpop.permute.xlu0 %1096  ;;  %1118 = vst.msk [vmem:[#allocation3 + $0x28] sm:$0xff] %vm1112_vm12, %v1099_v31 }
 0x18e   : > { %1117 = vst.msk [vmem:[#allocation3 + $0x20] sm:$0xff] %vm1112_vm12, %v1097_v28 }
 0x190   : > { %3373 = vmatpush3.bf16.msra.mxu0 %v3662_v19  ;;  %v1270_v33 = vld [vmem:[#allocation3 + $0x18] sm:$0xff]  ;;  %v1245_v34 = vpop.permute.xlu1 %1244 }
 0x191   : > { %3374 = vmatprep.subr.bf16.mxu0 %v3665_v25  ;;  %v1269_v32 = vld [vmem:[#allocation3 + $0x10] sm:$0xff]  ;;  %v1243_v62 = vpop.permute.xlu0 %1242  ;;  %2140 = vst.msk [vmem:[#allocation3 + $0x18] sm:$0xff] %vm894_vm11, %v3667_v30 }
 0x192   : > { %3336 = vmatprep.mubr.msk.bf16.mxu0 %vm1299_vm14, %v1269_v32  ;;  %2139 = vst.msk [vmem:[#allocation3 + $0x10] sm:$0xff] %vm894_vm11, %v3666_v26  ;;  %v3674_v32 = vld [vmem:[%s4934_s12] sm:$0xff]  }
 0x193   : > { %1263 = vst.msk [vmem:[#allocation3 + $0x20] sm:$0xff] %vm1258_vm13, %v1243_v62  ;;  %3337 = vmatmul.mubr.msk.bf16.gmra.mrb[4].mxu0 %vm1299_vm14, %v1270_v33  ;;  %1264 = vst.msk [vmem:[#allocation3 + $0x28] sm:$0xff] %vm1258_vm13, %v1245_v34  ;;  %3392 = vmatprep.subr.bf16.mxu1 %v3674_v32 }
 0x194   : > { %3375 = vmatpush3.bf16.msra.mxu0 %v3665_v25  ;;  %v1697_v37 = vpop.permute.xlu1 %1696 }
 0x195   : > { %v1695_v36 = vpop.permute.xlu0 %1694  ;;  %1719 = vst.msk [vmem:[#allocation3 + $0x48] sm:$0xff] %vm1112_vm12, %v1697_v37 }
 0x196   : > { %1718 = vst.msk [vmem:[#allocation3 + $0x40] sm:$0xff] %vm1112_vm12, %v1695_v36 }
 0x198   : > { %v1101_v42 = vpop.permute.xlu1 %1100 }
 0x199   : > { %v1839_v40 = vpop.permute.xlu0 %1838  ;;  %1119 = vst.msk [vmem:[#allocation3 + $0x30] sm:$0xff] %vm1112_vm12, %v1101_v42 }
 0x19a   : > { %v1271_v38 = vld [vmem:[#allocation3 + $0x20] sm:$0xff]  ;;  %1862 = vst.msk [vmem:[#allocation3 + $0x40] sm:$0xff] %vm1258_vm13, %v1839_v40  ;;  %v1272_v41 = vld [vmem:[#allocation3 + $0x28] sm:$0xff] }
 0x19b   : > { %3340 = vmatprep.mubr.msk.bf16.mxu0 %vm1299_vm14, %v1271_v38  ;;  %2141 = vst.msk [vmem:[#allocation3 + $0x20] sm:$0xff] %vm894_vm11, %v3670_v35  ;;  %2142 = vst.msk [vmem:[#allocation3 + $0x28] sm:$0xff] %vm894_vm11, %v3671_v39 }
 0x19c   : > { %3341 = vmatmul.mubr.msk.bf16.gmra.mrb[8].mxu0 %vm1299_vm14, %v1272_v41  ;;  %v1103_v44 = vpop.permute.xlu1 %1102 }
 0x19d   : > { %v1841_v43 = vpop.permute.xlu0 %1840  ;;  %1120 = vst.msk [vmem:[#allocation3 + $0x38] sm:$0xff] %vm1112_vm12, %v1103_v44 }
 0x19e   : > { %1863 = vst.msk [vmem:[#allocation3 + $0x48] sm:$0xff] %vm1258_vm13, %v1841_v43 }
 0x1a0   : > { %v1249_v46 = vpop.permute.xlu1 %1248 }
 0x1a1   : > { %v1247_v55 = vpop.permute.xlu0 %1246  ;;  %v1870_v45 = vld [vmem:[#allocation3 + $0x40] sm:$0xff]  ;;  %1266 = vst.msk [vmem:[#allocation3 + $0x38] sm:$0xff] %vm1258_vm13, %v1249_v46 }
 0x1a2   : > { %1265 = vst.msk [vmem:[#allocation3 + $0x30] sm:$0xff] %vm1258_vm13, %v1247_v55  ;;  %3354 = vmatprep.mubr.msk.bf16.mxu1 %vm1299_vm14, %v1870_v45 }
 0x1a4   : > { %v1701_v51 = vpop.permute.xlu1 %1700 }
 0x1a5   : > { %v1871_v47 = vld [vmem:[#allocation3 + $0x48] sm:$0xff]  ;;  %v1699_v49 = vpop.permute.xlu0 %1698  ;;  %1721 = vst.msk [vmem:[#allocation3 + $0x58] sm:$0xff] %vm1112_vm12, %v1701_v51 }
 0x1a6   : > { %3355 = vmatmul.mubr.msk.bf16.vlgmr.msra.gmra.mrb[0].mxu1 %vm1299_vm14, %v1871_v47  ;;  %1720 = vst.msk [vmem:[#allocation3 + $0x50] sm:$0xff] %vm1112_vm12, %v1699_v49 }
 0x1a7   : > { %3393 = vmatpush3.bf16.msra.mxu1 %v3674_v32 }
 0x1a8   : > { %v1274_v53 = vld [vmem:[#allocation3 + $0x38] sm:$0xff]  ;;  %v1845_v54 = vpop.permute.xlu1 %1844 }
 0x1a9   : > { %v1273_v0 = vld [vmem:[#allocation3 + $0x30] sm:$0xff]  ;;  %v1843_v52 = vpop.permute.xlu0 %1842  ;;  %2144 = vst.msk [vmem:[#allocation3 + $0x38] sm:$0xff] %vm894_vm11, %v3673_v50 }
 0x1aa   : > { %3344 = vmatprep.mubr.msk.bf16.mxu0 %vm1299_vm14, %v1273_v0  ;;  %2143 = vst.msk [vmem:[#allocation3 + $0x30] sm:$0xff] %vm894_vm11, %v3672_v48 }
 0x1ab   : > { %1864 = vst.msk [vmem:[#allocation3 + $0x50] sm:$0xff] %vm1258_vm13, %v1843_v52  ;;  %3345 = vmatmul.mubr.msk.bf16.gmra.mrb[12].mxu0 %vm1299_vm14, %v1274_v53  ;;  %1865 = vst.msk [vmem:[#allocation3 + $0x58] sm:$0xff] %vm1258_vm13, %v1845_v54 }
 0x1ac   : > { %v2332_v58 = vpop.permute.xlu1 %2331 }
 0x1ad   : > { %v2330_v56 = vpop.permute.xlu0 %2329  ;;  %2354 = vst.msk [vmem:[#allocation3 + $0x8] sm:$0xff] %vm1112_vm12, %v2332_v58 }
 0x1ae   : > { %2353 = vst.msk [vmem:[#allocation3] sm:$0xff] %vm1112_vm12, %v2330_v56 }
 0x1b0   : > { %v2476_v61 = vpop.permute.xlu1 %2475 }
 0x1b1   : > { %v2474_v59 = vpop.permute.xlu0 %2473  ;;  %2498 = vst.msk [vmem:[#allocation3 + $0x8] sm:$0xff] %vm1258_vm13, %v2476_v61 }
 0x1b2   : > { %v1872_v57 = vld [vmem:[#allocation3 + $0x50] sm:$0xff]  ;;  %2497 = vst.msk [vmem:[#allocation3] sm:$0xff] %vm1258_vm13, %v2474_v59  ;;  %v1873_v60 = vld [vmem:[#allocation3 + $0x58] sm:$0xff] }
 0x1b3   : > { %3358 = vmatprep.mubr.msk.bf16.mxu1 %vm1299_vm14, %v1872_v57 }
 0x1b4   : > { %3359 = vmatmul.mubr.msk.bf16.gmra.mrb[4].mxu1 %vm1299_vm14, %v1873_v60  ;;  %v1705_v1 = vpop.permute.xlu1 %1704 }
 0x1b5   : > { %v1703_v63 = vpop.permute.xlu0 %1702  ;;  %1723 = vst.msk [vmem:[#allocation3 + $0x68] sm:$0xff] %vm1112_vm12, %v1705_v1 }
 0x1b6   : > { %1722 = vst.msk [vmem:[#allocation3 + $0x60] sm:$0xff] %vm1112_vm12, %v1703_v63 }
 0x1b8   : > { %v1849_v4 = vpop.permute.xlu1 %1848  ;;  %v2506_v5 = vld [vmem:[#allocation3 + $0x8] sm:$0xff] }
 0x1b9   : > { %v2505_v2 = vld [vmem:[#allocation3] sm:$0xff]  ;;  %v1847_v3 = vpop.permute.xlu0 %1846  ;;  %1867 = vst.msk [vmem:[#allocation3 + $0x68] sm:$0xff] %vm1258_vm13, %v1849_v4 }
 0x1ba   : > { %3376 = vmatprep.mubr.msk.bf16.mxu0 %vm1299_vm14, %v2505_v2  ;;  %1866 = vst.msk [vmem:[#allocation3 + $0x60] sm:$0xff] %vm1258_vm13, %v1847_v3 }
 0x1bb   : > { %3377 = vmatmul.mubr.msk.bf16.vlgmr.msra.gmra.mrb[16].mxu0 %vm1299_vm14, %v2506_v5 }
 0x1bc   : > { %v2336_v7 = vpop.permute.xlu1 %2335 }
 0x1bd   : > { %v2334_v6 = vpop.permute.xlu0 %2333  ;;  %2356 = vst.msk [vmem:[#allocation3 + $0x18] sm:$0xff] %vm1112_vm12, %v2336_v7 }
 0x1be   : > { %2355 = vst.msk [vmem:[#allocation3 + $0x10] sm:$0xff] %vm1112_vm12, %v2334_v6 }
 0x1c0   : > { %v1875_v10 = vld [vmem:[#allocation3 + $0x68] sm:$0xff]  ;;  %v2480_v11 = vpop.permute.xlu1 %2479 }
 0x1c1   : > { %v1874_v8 = vld [vmem:[#allocation3 + $0x60] sm:$0xff]  ;;  %v2478_v9 = vpop.permute.xlu0 %2477  ;;  %2500 = vst.msk [vmem:[#allocation3 + $0x18] sm:$0xff] %vm1258_vm13, %v2480_v11 }
 0x1c2   : > { %3362 = vmatprep.mubr.msk.bf16.mxu1 %vm1299_vm14, %v1874_v8  ;;  %2499 = vst.msk [vmem:[#allocation3 + $0x10] sm:$0xff] %vm1258_vm13, %v2478_v9 }
 0x1c3   : > { %3363 = vmatmul.mubr.msk.bf16.gmra.mrb[8].mxu1 %vm1299_vm14, %v1875_v10 }
 0x1c4   : > { %v1709_v14 = vpop.permute.xlu1 %1708 }
 0x1c5   : > { %v1707_v12 = vpop.permute.xlu0 %1706  ;;  %1725 = vst.msk [vmem:[#allocation3 + $0x78] sm:$0xff] %vm1112_vm12, %v1709_v14 }
 0x1c6   : > { %1724 = vst.msk [vmem:[#allocation3 + $0x70] sm:$0xff] %vm1112_vm12, %v1707_v12 }
 0x1c8   : > { %v2508_v16 = vld [vmem:[#allocation3 + $0x18] sm:$0xff]  ;;  %v1853_v17 = vpop.permute.xlu1 %1852 }
 0x1c9   : > { %v2507_v13 = vld [vmem:[#allocation3 + $0x10] sm:$0xff]  ;;  %v1851_v15 = vpop.permute.xlu0 %1850  ;;  %1869 = vst.msk [vmem:[#allocation3 + $0x78] sm:$0xff] %vm1258_vm13, %v1853_v17 }
 0x1ca   : > { %3380 = vmatprep.mubr.msk.bf16.mxu0 %vm1299_vm14, %v2507_v13  ;;  %1868 = vst.msk [vmem:[#allocation3 + $0x70] sm:$0xff] %vm1258_vm13, %v1851_v15 }
 0x1cb   : > { %3381 = vmatmul.mubr.msk.bf16.gmra.mrb[20].mxu0 %vm1299_vm14, %v2508_v16 }
 0x1cc   : > { %v2340_v19 = vpop.permute.xlu1 %2339 }
 0x1cd   : > { %v2338_v18 = vpop.permute.xlu0 %2337  ;;  %2358 = vst.msk [vmem:[#allocation3 + $0x28] sm:$0xff] %vm1112_vm12, %v2340_v19 }
 0x1ce   : > { %2357 = vst.msk [vmem:[#allocation3 + $0x20] sm:$0xff] %vm1112_vm12, %v2338_v18 }
 0x1d0   : > { %v2484_v22 = vpop.permute.xlu1 %2483  ;;  %v1877_v23 = vld [vmem:[#allocation3 + $0x78] sm:$0xff] }
 0x1d1   : > { %v1876_v20 = vld [vmem:[#allocation3 + $0x70] sm:$0xff]  ;;  %v2482_v21 = vpop.permute.xlu0 %2481  ;;  %2502 = vst.msk [vmem:[#allocation3 + $0x28] sm:$0xff] %vm1258_vm13, %v2484_v22 }
 0x1d2   : > { %3366 = vmatprep.mubr.msk.bf16.mxu1 %vm1299_vm14, %v1876_v20  ;;  %2501 = vst.msk [vmem:[#allocation3 + $0x20] sm:$0xff] %vm1258_vm13, %v2482_v21 }
 0x1d3   : > { %3367 = vmatmul.mubr.msk.bf16.gmra.mrb[12].mxu1 %vm1299_vm14, %v1877_v23 }
 0x1d4   : > { %v2344_v25 = vpop.permute.xlu1 %2343 }
 0x1d5   : > { %v2342_v24 = vpop.permute.xlu0 %2341  ;;  %2360 = vst.msk [vmem:[#allocation3 + $0x38] sm:$0xff] %vm1112_vm12, %v2344_v25 }
 0x1d6   : > { %2359 = vst.msk [vmem:[#allocation3 + $0x30] sm:$0xff] %vm1112_vm12, %v2342_v24 }
 0x1d8   : > { %v2510_v28 = vld [vmem:[#allocation3 + $0x28] sm:$0xff]  ;;  %v2488_v29 = vpop.permute.xlu1 %2487 }
 0x1d9   : > { %v2509_v26 = vld [vmem:[#allocation3 + $0x20] sm:$0xff]  ;;  %v2486_v27 = vpop.permute.xlu0 %2485  ;;  %2504 = vst.msk [vmem:[#allocation3 + $0x38] sm:$0xff] %vm1258_vm13, %v2488_v29 }
 0x1da   : > { %3384 = vmatprep.mubr.msk.bf16.mxu0 %vm1299_vm14, %v2509_v26  ;;  %2503 = vst.msk [vmem:[#allocation3 + $0x30] sm:$0xff] %vm1258_vm13, %v2486_v27  ;;  %v4715_v26 = vld [vmem:[%s4935_s22] ss:$0 sm:$0xff] }
 0x1db   : > { %3385 = vmatmul.mubr.msk.bf16.gmra.mrb[24].mxu0 %vm1299_vm14, %v2510_v28 }
 0x1e0   : > { %v2512_v31 = vld [vmem:[#allocation3 + $0x38] sm:$0xff] }
 0x1e1   : > { %v2511_v30 = vld [vmem:[#allocation3 + $0x30] sm:$0xff] }
 0x1e2   : > { %3388 = vmatprep.mubr.msk.bf16.mxu0 %vm1299_vm14, %v2511_v30 }
 0x1e3   : > { %3389 = vmatmul.mubr.msk.bf16.gmra.mrb[28].mxu0 %vm1299_vm14, %v2512_v31 }
 0x25e   : > { %v3334_v62 = vpop.f32.mrb[0].mxu0 }
 0x25f   : > { %1423 = vst.msk [vmem:[#allocation4 + $0x10] sm:$0xff] %vm894_vm11, %v3334_v62  ;;  %v1358_v33 = vpop.f32.mrb[1].mxu0 }
 0x260   : > { %1421 = vst.msk [vmem:[#allocation4] sm:$0xff] %vm894_vm11, %v1358_v33  ;;  %v3335_v34 = vpop.f32.mrb[2].mxu0 }
 0x261   : > { %1424 = vst.msk [vmem:[#allocation4 + $0x18] sm:$0xff] %vm894_vm11, %v3335_v34  ;;  %v1361_v35 = vpop.f32.mrb[3].mxu0 }
 0x262   : > { %1422 = vst.msk [vmem:[#allocation4 + $0x8] sm:$0xff] %vm894_vm11, %v1361_v35 }
 0x266   : > { %v3338_v36 = vpop.f32.mrb[4].mxu0  ;;  %v2026_v55 = vld [vmem:[#allocation4 + $0x10] sm:$0xff] }
 0x267   : > { %1427 = vst.msk [vmem:[#allocation4 + $0x30] sm:$0xff] %vm894_vm11, %v3338_v36  ;;  %v1374_v37 = vpop.f32.mrb[5].mxu0  ;;  %v2024_v47 = vld [vmem:[#allocation4] sm:$0xff] }
 0x268   : > { %1425 = vst.msk [vmem:[#allocation4 + $0x20] sm:$0xff] %vm894_vm11, %v1374_v37  ;;  %v3339_v38 = vpop.f32.mrb[6].mxu0  ;;  %v2027_v0 = vld [vmem:[#allocation4 + $0x18] sm:$0xff] }
 0x269   : > { %1428 = vst.msk [vmem:[#allocation4 + $0x38] sm:$0xff] %vm894_vm11, %v3339_v38  ;;  %v1377_v39 = vpop.f32.mrb[7].mxu0  ;;  %v2025_v52 = vld [vmem:[#allocation4 + $0x8] sm:$0xff] }
 0x26a   : > { %1426 = vst.msk [vmem:[#allocation4 + $0x28] sm:$0xff] %vm894_vm11, %v1377_v39 }
 0x26e   : > { %v2030_v60 = vld [vmem:[#allocation4 + $0x30] sm:$0xff] }
 0x26f   : > { %v3342_v40 = vpop.f32.mrb[8].mxu0  ;;  %v2028_v1 = vld [vmem:[#allocation4 + $0x20] sm:$0xff] }
 0x270   : > { %1431 = vst.msk [vmem:[#allocation4 + $0x50] sm:$0xff] %vm894_vm11, %v3342_v40  ;;  %v1390_v41 = vpop.f32.mrb[9].mxu0  ;;  %v2031_v4 = vld [vmem:[#allocation4 + $0x38] sm:$0xff] }
 0x271   : > { %1429 = vst.msk [vmem:[#allocation4 + $0x40] sm:$0xff] %vm894_vm11, %v1390_v41  ;;  %v3343_v42 = vpop.f32.mrb[10].mxu0  ;;  %v2029_v7 = vld [vmem:[#allocation4 + $0x28] sm:$0xff] }
 0x272   : > { %1432 = vst.msk [vmem:[#allocation4 + $0x58] sm:$0xff] %vm894_vm11, %v3343_v42  ;;  %v1393_v43 = vpop.f32.mrb[11].mxu0 }
 0x273   : > { %1430 = vst.msk [vmem:[#allocation4 + $0x48] sm:$0xff] %vm894_vm11, %v1393_v43 }
 0x277   : > { %v2034_v22 = vld [vmem:[#allocation4 + $0x50] sm:$0xff] }
 0x278   : > { %v2032_v25 = vld [vmem:[#allocation4 + $0x40] sm:$0xff] }
 0x279   : > { %v3356_v44 = vpop.f32.mrb[0].mxu1  ;;  %v2035_v29 = vld [vmem:[#allocation4 + $0x58] sm:$0xff] }
 0x27a   : > { %v2042_v45 = vadd.f32 %v3356_v44, %v2026_v55  ;;  %v1961_v46 = vpop.f32.mrb[1].mxu1  ;;  %v2033_v62 = vld [vmem:[#allocation4 + $0x48] sm:$0xff] }
 0x27b   : > { %v2040_v48 = vadd.f32 %v2024_v47, %v1961_v46  ;;  %v3357_v49 = vpop.f32.mrb[2].mxu1 }
 0x27c   : > { %2058 = vst.msk [vmem:[#allocation4 + $0x10] sm:$0xff] %vm894_vm11, %v2042_v45  ;;  %v2043_v50 = vadd.f32 %v3357_v49, %v2027_v0  ;;  %v1964_v51 = vpop.f32.mrb[3].mxu1 }
 0x27d   : > { %2056 = vst.msk [vmem:[#allocation4] sm:$0xff] %vm894_vm11, %v2040_v48  ;;  %v2041_v53 = vadd.f32 %v2025_v52, %v1964_v51 }
 0x27e   : > { %2059 = vst.msk [vmem:[#allocation4 + $0x18] sm:$0xff] %vm894_vm11, %v2043_v50  ;;  %v3346_v54 = vpop.f32.mrb[12].mxu0 }
 0x27f   : > { %2057 = vst.msk [vmem:[#allocation4 + $0x8] sm:$0xff] %vm894_vm11, %v2041_v53  ;;  %1435 = vst.msk [vmem:[#allocation4 + $0x70] sm:$0xff] %vm894_vm11, %v3346_v54  ;;  %v1406_v56 = vpop.f32.mrb[13].mxu0 }
 0x280   : > { %1433 = vst.msk [vmem:[#allocation4 + $0x60] sm:$0xff] %vm894_vm11, %v1406_v56  ;;  %v3347_v57 = vpop.f32.mrb[14].mxu0 }
 0x281   : > { %1436 = vst.msk [vmem:[#allocation4 + $0x78] sm:$0xff] %vm894_vm11, %v3347_v57  ;;  %v1409_v58 = vpop.f32.mrb[15].mxu0 }
 0x282   : > { %1434 = vst.msk [vmem:[#allocation4 + $0x68] sm:$0xff] %vm894_vm11, %v1409_v58 }
 0x283   : > { %v2661_v10 = vld [vmem:[#allocation4 + $0x10] sm:$0xff] }
 0x284   : > { %v2659_v13 = vld [vmem:[#allocation4] sm:$0xff] }
 0x285   : > { %v2662_v16 = vld [vmem:[#allocation4 + $0x18] sm:$0xff] }
 0x286   : > { %v2660_v19 = vld [vmem:[#allocation4 + $0x8] sm:$0xff] }
 0x287   : > { %v3360_v59 = vpop.f32.mrb[4].mxu1 }
 0x288   : > { %v2046_v61 = vadd.f32 %v3360_v59, %v2030_v60  ;;  %v1977_v63 = vpop.f32.mrb[5].mxu1  ;;  %v2038_v59 = vld [vmem:[#allocation4 + $0x70] sm:$0xff] }
 0x289   : > { %v2044_v2 = vadd.f32 %v2028_v1, %v1977_v63  ;;  %v3361_v3 = vpop.f32.mrb[6].mxu1  ;;  %v2036_v1 = vld [vmem:[#allocation4 + $0x60] sm:$0xff] }
 0x28a   : > { %2062 = vst.msk [vmem:[#allocation4 + $0x30] sm:$0xff] %vm894_vm11, %v2046_v61  ;;  %v2047_v5 = vadd.f32 %v3361_v3, %v2031_v4  ;;  %v1980_v6 = vpop.f32.mrb[7].mxu1 }
 0x28b   : > { %2060 = vst.msk [vmem:[#allocation4 + $0x20] sm:$0xff] %vm894_vm11, %v2044_v2  ;;  %v2045_v8 = vadd.f32 %v2029_v7, %v1980_v6 }
 0x28c   : > { %2063 = vst.msk [vmem:[#allocation4 + $0x38] sm:$0xff] %vm894_vm11, %v2047_v5  ;;  %v2039_v5 = vld [vmem:[#allocation4 + $0x78] sm:$0xff] }
 0x28d   : > { %2061 = vst.msk [vmem:[#allocation4 + $0x28] sm:$0xff] %vm894_vm11, %v2045_v8 }
 0x28e   : > { %v3378_v9 = vpop.f32.mrb[16].mxu0 }
 0x28f   : > { %v2677_v11 = vadd.f32 %v3378_v9, %v2661_v10  ;;  %v2596_v12 = vpop.f32.mrb[17].mxu0  ;;  %v2037_v10 = vld [vmem:[#allocation4 + $0x68] sm:$0xff] }
 0x290   : > { %v2675_v14 = vadd.f32 %v2659_v13, %v2596_v12  ;;  %v3379_v15 = vpop.f32.mrb[18].mxu0 }
 0x291   : > { %2693 = vst.msk [vmem:[#allocation4 + $0x10] sm:$0xff] %vm894_vm11, %v2677_v11  ;;  %v2678_v17 = vadd.f32 %v3379_v15, %v2662_v16  ;;  %v2599_v18 = vpop.f32.mrb[19].mxu0  ;;  %v2665_v45 = vld [vmem:[#allocation4 + $0x30] sm:$0xff] }
 0x292   : > { %2691 = vst.msk [vmem:[#allocation4] sm:$0xff] %vm894_vm11, %v2675_v14  ;;  %v2676_v20 = vadd.f32 %v2660_v19, %v2599_v18  ;;  %v2663_v49 = vld [vmem:[#allocation4 + $0x20] sm:$0xff] }
 0x293   : > { %2694 = vst.msk [vmem:[#allocation4 + $0x18] sm:$0xff] %vm894_vm11, %v2678_v17  ;;  %v2666_v52 = vld [vmem:[#allocation4 + $0x38] sm:$0xff] }
 0x294   : > { %2692 = vst.msk [vmem:[#allocation4 + $0x8] sm:$0xff] %vm894_vm11, %v2676_v20  ;;  %v2664_v56 = vld [vmem:[#allocation4 + $0x28] sm:$0xff] }
 0x296   : > { %v3364_v21 = vpop.f32.mrb[8].mxu1 }
 0x297   : > { %v2050_v23 = vadd.f32 %v3364_v21, %v2034_v22  ;;  %v1993_v24 = vpop.f32.mrb[9].mxu1 }
 0x298   : > { %v2048_v27 = vadd.f32 %v2032_v25, %v1993_v24  ;;  %v3365_v28 = vpop.f32.mrb[10].mxu1  ;;  %v2709_v30 = vld [vmem:[#allocation4 + $0x10] sm:$0xff] }
 0x299   : > { %2066 = vst.msk [vmem:[#allocation4 + $0x50] sm:$0xff] %vm894_vm11, %v2050_v23  ;;  %v2051_v31 = vadd.f32 %v3365_v28, %v2035_v29  ;;  %v1996_v32 = vpop.f32.mrb[11].mxu1  ;;  %v2707_v33 = vld [vmem:[#allocation4] sm:$0xff]  ;;  %v2732_v38 = vadd.f32 %v4715_v26, %v2709_v30 }
 0x29a   : > { %2064 = vst.msk [vmem:[#allocation4 + $0x40] sm:$0xff] %vm894_vm11, %v2048_v27  ;;  %v2049_v34 = vadd.f32 %v2033_v62, %v1996_v32  ;;  %v2730_v35 = vadd.f32 %v4715_v26, %v2707_v33  ;;  %v2710_v36 = vld [vmem:[#allocation4 + $0x18] sm:$0xff] }
 0x29b   : > { %2067 = vst.msk [vmem:[#allocation4 + $0x58] sm:$0xff] %vm894_vm11, %v2051_v31  ;;  %v2708_v37 = vld [vmem:[#allocation4 + $0x8] sm:$0xff]  ;;  %v2733_v39 = vadd.f32 %v4715_v26, %v2710_v36  ;;  %v2748_v44 = vmax.f32 %v2732_v38, 0.0 }
 0x29c   : > { %2065 = vst.msk [vmem:[#allocation4 + $0x48] sm:$0xff] %vm894_vm11, %v2049_v34  ;;  %v2731_v40 = vadd.f32 %v4715_v26, %v2708_v37  ;;  %v2746_v42 = vmax.f32 %v2730_v35, 0.0 }
 0x29d   : > { %v2749_v41 = vmax.f32 %v2733_v39, 0.0 }
 0x29e   : > { %v2747_v43 = vmax.f32 %v2731_v40, 0.0  ;;  %v3382_v55 = vpop.f32.mrb[20].mxu0 }
 0x29f   : > { %v2681_v47 = vadd.f32 %v3382_v55, %v2665_v45  ;;  %v2612_v48 = vpop.f32.mrb[21].mxu0  ;;  %v2763_v0 = vpack.c.bf16 %v2749_v41, %v2748_v44 }
 0x2a0   : > { %v2762_v46 = vpack.c.bf16 %v2747_v43, %v2746_v42  ;;  %v2679_v50 = vadd.f32 %v2663_v49, %v2612_v48  ;;  %v3383_v51 = vpop.f32.mrb[22].mxu0  ;;  %v2669_v21 = vld [vmem:[#allocation4 + $0x50] sm:$0xff] }
 0x2a1   : > { %2697 = vst.msk [vmem:[#allocation4 + $0x30] sm:$0xff] %vm894_vm11, %v2681_v47  ;;  %v2682_v53 = vadd.f32 %v3383_v51, %v2666_v52  ;;  %v2615_v54 = vpop.f32.mrb[23].mxu0  ;;  %v2667_v25 = vld [vmem:[#allocation4 + $0x40] sm:$0xff] }
 0x2a2   : > { %3394 = vmatprep.mubr.msk.bf16.mxu1 %vm894_vm11, %v2762_v46  ;;  %2695 = vst.msk [vmem:[#allocation4 + $0x20] sm:$0xff] %vm894_vm11, %v2679_v50  ;;  %v2680_v57 = vadd.f32 %v2664_v56, %v2615_v54  ;;  %v2670_v30 = vld [vmem:[#allocation4 + $0x58] sm:$0xff] }
 0x2a3   : > { %3395 = vmatmul.mubr.msk.bf16.vlgmr.msra.gmra.mrb[16].mxu1 %vm894_vm11, %v2763_v0  ;;  %2698 = vst.msk [vmem:[#allocation4 + $0x38] sm:$0xff] %vm894_vm11, %v2682_v53  ;;  %v2668_v62 = vld [vmem:[#allocation4 + $0x48] sm:$0xff] }
 0x2a4   : > { %2696 = vst.msk [vmem:[#allocation4 + $0x28] sm:$0xff] %vm894_vm11, %v2680_v57 }
 0x2a6   : > { %v3368_v58 = vpop.f32.mrb[12].mxu1 }
 0x2a7   : > { %v2054_v61 = vadd.f32 %v3368_v58, %v2038_v59  ;;  %v2009_v63 = vpop.f32.mrb[13].mxu1 }
 0x2a8   : > { %v2713_v60 = vld [vmem:[#allocation4 + $0x30] sm:$0xff]  ;;  %v2052_v3 = vadd.f32 %v2036_v1, %v2009_v63  ;;  %v3369_v4 = vpop.f32.mrb[14].mxu1 }
 0x2a9   : > { %v2711_v2 = vld [vmem:[#allocation4 + $0x20] sm:$0xff]  ;;  %2070 = vst.msk [vmem:[#allocation4 + $0x70] sm:$0xff] %vm894_vm11, %v2054_v61  ;;  %v2055_v8 = vadd.f32 %v3369_v4, %v2039_v5  ;;  %v2012_v9 = vpop.f32.mrb[15].mxu1  ;;  %v2736_v12 = vadd.f32 %v4715_v26, %v2713_v60 }
 0x2aa   : > { %v2734_v6 = vadd.f32 %v4715_v26, %v2711_v2  ;;  %v2714_v7 = vld [vmem:[#allocation4 + $0x38] sm:$0xff]  ;;  %2068 = vst.msk [vmem:[#allocation4 + $0x60] sm:$0xff] %vm894_vm11, %v2052_v3  ;;  %v2053_v14 = vadd.f32 %v2037_v10, %v2012_v9 }
 0x2ab   : > { %v2712_v11 = vld [vmem:[#allocation4 + $0x28] sm:$0xff]  ;;  %v2737_v13 = vadd.f32 %v4715_v26, %v2714_v7  ;;  %2071 = vst.msk [vmem:[#allocation4 + $0x78] sm:$0xff] %vm894_vm11, %v2055_v8  ;;  %v2752_v19 = vmax.f32 %v2736_v12, 0.0 }
 0x2ac   : > { %v2735_v15 = vadd.f32 %v4715_v26, %v2712_v11  ;;  %2069 = vst.msk [vmem:[#allocation4 + $0x68] sm:$0xff] %vm894_vm11, %v2053_v14  ;;  %v2750_v17 = vmax.f32 %v2734_v6, 0.0  ;;  %v3271_v11 = vld [vmem:[%s4936_s6] ss:$0 sm:$0xff] }
 0x2ad   : > { %v2753_v16 = vmax.f32 %v2737_v13, 0.0 }
 0x2ae   : > { %v2751_v18 = vmax.f32 %v2735_v15, 0.0  ;;  %v3386_v20 = vpop.f32.mrb[24].mxu0 }
 0x2af   : > { %v2685_v23 = vadd.f32 %v3386_v20, %v2669_v21  ;;  %v2628_v24 = vpop.f32.mrb[25].mxu0  ;;  %v2765_v27 = vpack.c.bf16 %v2753_v16, %v2752_v19 }
 0x2b0   : > { %v2764_v22 = vpack.c.bf16 %v2751_v18, %v2750_v17  ;;  %v2683_v28 = vadd.f32 %v2667_v25, %v2628_v24  ;;  %v3387_v29 = vpop.f32.mrb[26].mxu0  ;;  %v2673_v35 = vld [vmem:[#allocation4 + $0x70] sm:$0xff] }
 0x2b1   : > { %2701 = vst.msk [vmem:[#allocation4 + $0x50] sm:$0xff] %vm894_vm11, %v2685_v23  ;;  %v2686_v31 = vadd.f32 %v3387_v29, %v2670_v30  ;;  %v2631_v32 = vpop.f32.mrb[27].mxu0  ;;  %v2671_v39 = vld [vmem:[#allocation4 + $0x60] sm:$0xff] }
 0x2b2   : > { %3398 = vmatprep.mubr.msk.bf16.mxu1 %vm894_vm11, %v2764_v22  ;;  %2699 = vst.msk [vmem:[#allocation4 + $0x40] sm:$0xff] %vm894_vm11, %v2683_v28  ;;  %v2684_v33 = vadd.f32 %v2668_v62, %v2631_v32  ;;  %v2674_v43 = vld [vmem:[#allocation4 + $0x78] sm:$0xff] }
 0x2b3   : > { %3399 = vmatmul.mubr.msk.bf16.gmra.mrb[20].mxu1 %vm894_vm11, %v2765_v27  ;;  %2702 = vst.msk [vmem:[#allocation4 + $0x58] sm:$0xff] %vm894_vm11, %v2686_v31  ;;  %v2672_v47 = vld [vmem:[#allocation4 + $0x68] sm:$0xff] }
 0x2b4   : > { %2700 = vst.msk [vmem:[#allocation4 + $0x48] sm:$0xff] %vm894_vm11, %v2684_v33 }
 0x2b6   : > { %v3390_v34 = vpop.f32.mrb[28].mxu0 }
 0x2b7   : > { %v2689_v37 = vadd.f32 %v3390_v34, %v2673_v35  ;;  %v2644_v38 = vpop.f32.mrb[29].mxu0 }
 0x2b8   : > { %v2717_v36 = vld [vmem:[#allocation4 + $0x50] sm:$0xff]  ;;  %v2687_v41 = vadd.f32 %v2671_v39, %v2644_v38  ;;  %v3391_v42 = vpop.f32.mrb[30].mxu0 }
 0x2b9   : > { %v2715_v40 = vld [vmem:[#allocation4 + $0x40] sm:$0xff]  ;;  %2705 = vst.msk [vmem:[#allocation4 + $0x70] sm:$0xff] %vm894_vm11, %v2689_v37  ;;  %v2690_v45 = vadd.f32 %v3391_v42, %v2674_v43  ;;  %v2647_v46 = vpop.f32.mrb[31].mxu0  ;;  %v2740_v49 = vadd.f32 %v4715_v26, %v2717_v36 }
 0x2ba   : > { %v2738_v44 = vadd.f32 %v4715_v26, %v2715_v40  ;;  %v2718_v55 = vld [vmem:[#allocation4 + $0x58] sm:$0xff]  ;;  %2703 = vst.msk [vmem:[#allocation4 + $0x60] sm:$0xff] %vm894_vm11, %v2687_v41  ;;  %v2688_v50 = vadd.f32 %v2672_v47, %v2647_v46 }
 0x2bb   : > { %v2716_v48 = vld [vmem:[#allocation4 + $0x48] sm:$0xff]  ;;  %v2741_v0 = vadd.f32 %v4715_v26, %v2718_v55  ;;  %2706 = vst.msk [vmem:[#allocation4 + $0x78] sm:$0xff] %vm894_vm11, %v2690_v45  ;;  %v2756_v56 = vmax.f32 %v2740_v49, 0.0 }
 0x2bc   : > { %v2739_v51 = vadd.f32 %v4715_v26, %v2716_v48  ;;  %2704 = vst.msk [vmem:[#allocation4 + $0x68] sm:$0xff] %vm894_vm11, %v2688_v50  ;;  %v2754_v53 = vmax.f32 %v2738_v44, 0.0 }
 0x2bd   : > { %v2757_v52 = vmax.f32 %v2741_v0, 0.0 }
 0x2be   : > { %v2755_v54 = vmax.f32 %v2739_v51, 0.0 }
 0x2bf   : > { %v2767_v58 = vpack.c.bf16 %v2757_v52, %v2756_v56 }
 0x2c0   : > { %v2766_v57 = vpack.c.bf16 %v2755_v54, %v2754_v53  ;;  %v2721_v59 = vld [vmem:[#allocation4 + $0x70] sm:$0xff] }
 0x2c1   : > { %v2719_v60 = vld [vmem:[#allocation4 + $0x60] sm:$0xff]  ;;  %v2744_v2 = vadd.f32 %v4715_v26, %v2721_v59 }
 0x2c2   : > { %3402 = vmatprep.mubr.msk.bf16.mxu1 %vm894_vm11, %v2766_v57  ;;  %v2742_v61 = vadd.f32 %v4715_v26, %v2719_v60  ;;  %v2722_v63 = vld [vmem:[#allocation4 + $0x78] sm:$0xff] }
 0x2c3   : > { %3403 = vmatmul.mubr.msk.bf16.gmra.mrb[24].mxu1 %vm894_vm11, %v2767_v58  ;;  %v2720_v1 = vld [vmem:[#allocation4 + $0x68] sm:$0xff]  ;;  %v2745_v3 = vadd.f32 %v4715_v26, %v2722_v63  ;;  %v2760_v8 = vmax.f32 %v2744_v2, 0.0 }
 0x2c4   : > { %v2743_v4 = vadd.f32 %v4715_v26, %v2720_v1  ;;  %v2758_v6 = vmax.f32 %v2742_v61, 0.0 }
 0x2c5   : > { %v2761_v5 = vmax.f32 %v2745_v3, 0.0 }
 0x2c6   : > { %v2759_v7 = vmax.f32 %v2743_v4, 0.0 }
 0x2c7   : > { %v2769_v10 = vpack.c.bf16 %v2761_v5, %v2760_v8 }
 0x2c8   : > { %v2768_v9 = vpack.c.bf16 %v2759_v7, %v2758_v6 }
 0x2ca   : > { %3406 = vmatprep.mubr.msk.bf16.mxu1 %vm894_vm11, %v2768_v9 }
 0x2cb   : > { %3407 = vmatmul.mubr.msk.bf16.gmra.mrb[28].mxu1 %vm894_vm11, %v2769_v10 }
 0x376   : > { %v3396_v12 = vpop.f32.mrb[16].mxu1 }
 0x377   : > { %v2852_v26 = vadd.f32 %v3396_v12, %v3271_v11  ;;  %v2843_v13 = vpop.f32.mrb[17].mxu1 }
 0x378   : > { %v2844_v14 = vadd.f32 %v3271_v11, %v2843_v13  ;;  %v3397_v15 = vpop.f32.mrb[18].mxu1 }
 0x379   : > { %2909 = vst.msk [vmem:[%s4296_s27 + $0x10] sm:$0xff] %vm2906_vm15, %v2852_v26  ;;  %v2855_v16 = vadd.f32 %v3397_v15, %v3271_v11  ;;  %v2846_v17 = vpop.f32.mrb[19].mxu1 }
 0x37a   : > { %2907 = vst.msk [vmem:[%s4296_s27] sm:$0xff] %vm2906_vm15, %v2844_v14  ;;  %v2847_v18 = vadd.f32 %v3271_v11, %v2846_v17 }
 0x37b   : > { %2910 = vst.msk [vmem:[%s4296_s27 + $0x18] sm:$0xff] %vm2906_vm15, %v2855_v16 }
 0x37c   : > { %2908 = vst.msk [vmem:[%s4296_s27 + $0x8] sm:$0xff] %vm2906_vm15, %v2847_v18 }
 0x386   : > { %v3400_v19 = vpop.f32.mrb[20].mxu1 }
 0x387   : > { %v2868_v20 = vadd.f32 %v3400_v19, %v3271_v11  ;;  %v2859_v21 = vpop.f32.mrb[21].mxu1 }
 0x388   : > { %v2860_v22 = vadd.f32 %v3271_v11, %v2859_v21  ;;  %v3401_v23 = vpop.f32.mrb[22].mxu1 }
 0x389   : > { %2913 = vst.msk [vmem:[%s4296_s27 + $0x30] sm:$0xff] %vm2906_vm15, %v2868_v20  ;;  %v2871_v24 = vadd.f32 %v3401_v23, %v3271_v11  ;;  %v2862_v25 = vpop.f32.mrb[23].mxu1 }
 0x38a   : > { %2911 = vst.msk [vmem:[%s4296_s27 + $0x20] sm:$0xff] %vm2906_vm15, %v2860_v22  ;;  %v2863_v27 = vadd.f32 %v3271_v11, %v2862_v25 }
 0x38b   : > { %2914 = vst.msk [vmem:[%s4296_s27 + $0x38] sm:$0xff] %vm2906_vm15, %v2871_v24 }
 0x38c   : > { %2912 = vst.msk [vmem:[%s4296_s27 + $0x28] sm:$0xff] %vm2906_vm15, %v2863_v27 }
 0x396   : > { %v3404_v28 = vpop.f32.mrb[24].mxu1 }
 0x397   : > { %v2884_v29 = vadd.f32 %v3404_v28, %v3271_v11  ;;  %v2875_v30 = vpop.f32.mrb[25].mxu1 }
 0x398   : > { %v2876_v31 = vadd.f32 %v3271_v11, %v2875_v30  ;;  %v3405_v32 = vpop.f32.mrb[26].mxu1 }
 0x399   : > { %2917 = vst.msk [vmem:[%s4296_s27 + $0x50] sm:$0xff] %vm2906_vm15, %v2884_v29  ;;  %v2887_v62 = vadd.f32 %v3405_v32, %v3271_v11  ;;  %v2878_v33 = vpop.f32.mrb[27].mxu1 }
 0x39a   : > { %2915 = vst.msk [vmem:[%s4296_s27 + $0x40] sm:$0xff] %vm2906_vm15, %v2876_v31  ;;  %v2879_v34 = vadd.f32 %v3271_v11, %v2878_v33 }
 0x39b   : > { %2918 = vst.msk [vmem:[%s4296_s27 + $0x58] sm:$0xff] %vm2906_vm15, %v2887_v62 }
 0x39c   : > { %2916 = vst.msk [vmem:[%s4296_s27 + $0x48] sm:$0xff] %vm2906_vm15, %v2879_v34 }
 0x39e   : > { %v3408_v35 = vpop.f32.mrb[28].mxu1 }
 0x39f   : > { %v2900_v36 = vadd.f32 %v3408_v35, %v3271_v11  ;;  %v2891_v37 = vpop.f32.mrb[29].mxu1 }
 0x3a0   : > { %v2892_v38 = vadd.f32 %v3271_v11, %v2891_v37  ;;  %v3409_v39 = vpop.f32.mrb[30].mxu1 }
 0x3a1   : > { %2921 = vst.msk [vmem:[%s4296_s27 + $0x70] sm:$0xff] %vm2906_vm15, %v2900_v36  ;;  %v2903_v40 = vadd.f32 %v3409_v39, %v3271_v11  ;;  %v2894_v41 = vpop.f32.mrb[31].mxu1 }
 0x3a2   : > { %2919 = vst.msk [vmem:[%s4296_s27 + $0x60] sm:$0xff] %vm2906_vm15, %v2892_v38  ;;  %v2895_v42 = vadd.f32 %v3271_v11, %v2894_v41 }
 0x3a3   : > { %2922 = vst.msk [vmem:[%s4296_s27 + $0x78] sm:$0xff] %vm2906_vm15, %v2903_v40 }
 0x3a4   : > { %2920 = vst.msk [vmem:[%s4296_s27 + $0x68] sm:$0xff] %vm2906_vm15, %v2895_v42 }
 0x3a5 PF: > { %s23_s14 = sadd.s32 1, %s3887_s14   ;;  %s4938_s27 = sld [smem:[#allocation13_spill]] }
 0x3a6   : > { %p4797_p3 = scmp.ge.s32.totalorder %s23_s14, 6   ;;  %s4939_s18 = sld [smem:[#allocation22_spill]] }
 0x3a7   : > { %s4940_s10 = sld [smem:[#allocation16_spill]]  ;;  %s4941_s11 = sld [smem:[#allocation17_spill]] }
 0x3a8   : > { %s4942_s12 = sld [smem:[#allocation18_spill]]  ;;  %s4943_s16 = sld [smem:[#allocation19_spill]] }
 0x3a9   : > { %s4945_s24 = smov %s3839_s25  ;;  %s4946_s25 = smov %s3843_s26 }
 0x3aa   : > { %s4947_s26 = smov %s4212_s19  ;;  %s4948_s28 = smov %s3855_s29 }
 0x3ab   : > { %s4949_s29 = smov %s4059_s15  ;;  %s4950_s30 = smov %s3863_s8 }
 0x3ac   : > { %s4951_s8 = smov %s3867_s9  ;;  %s4952_s9 = smov %s4939_s18 }
 0x3ad   :  { %22 = sbr.rel (!%p4797_p3) target bundleno = 19 (0x13), region = 126 }
 0x3ae   : > { %s4953_s13 = smov %s4943_s16 }
 0x3b4   :  { %2953 = vsyncpa [#allocation6], 1 }
 0x3b5   :  { %2955 = vsyncpa [#allocation6 + $0x1], 1 }
 0x3b6   :  { %2956 = vsyncpa [#allocation8], 1 }
 0x3b7   :  { %2958 = vsyncpa [#allocation8 + $0x1], 1 }

</bundles_post_ra>
